<compile_context>
chip_gen: v7x
topology: tpu7x:2x2x1
jax: 0.10.0
libtpu: 0.0.40
codegen_flags: <defaults>
</compile_context>

<pallas_src>
import math
from functools import partial

import jax
import jax.numpy as jnp
from jax import lax
from jax.experimental import pallas as pl
from jax.experimental.pallas import tpu as pltpu

_PAD = 8  # sublane-aligned zero guard rows at both ends of the hp scratch


def _mlp_kernel(x_ref, xt_ref, xb_ref, w1_ref, w2_ref, cvec_ref, b2_ref, m_ref,
                o_ref, hp_ref, *, W, R, T):
    """One (batch, row-tile) grid step: fc1 -> dwconv3x3 -> GELU -> fc2."""
    f32 = jnp.float32
    bf16 = jnp.bfloat16
    Chid = w1_ref.shape[1]
    t = pl.program_id(1)                  # row-tile index within the image

    w1 = w1_ref[...]                      # (Cin, Chid) bf16
    cvec = cvec_ref[...]                  # (11, Chid) f32: [b1, 9 dw taps, b_dw]
    b1 = cvec[0:1, :]

    def fc1(ref):                         # bf16 MXU matmul, f32 accumulate, + bias
        return jnp.dot(ref[...].astype(bf16), w1,
                       preferred_element_type=f32) + b1

    # hp layout along the token axis:
    #   [0, PAD)               zero guard (keeps the dj=-1 slice of row 0 in range)
    #   [PAD, PAD+W)           top halo image row (h of the row above the tile, or 0)
    #   [PAD+W, PAD+W+R)       the tile's R = TH*W rows of h
    #   [PAD+W+R, PAD+2W+R)    bottom halo image row (h of the row below, or 0)
    #   [PAD+2W+R, 2PAD+2W+R)  zero guard
    # Guards are rewritten every step (2*PAD rows, negligible) instead of only on
    # the first step so the kernel stays correct when the "parallel" grid axes
    # are split across TensorCores (each core has its own scratch).
    hp_ref[0:_PAD, :] = jnp.zeros((_PAD, Chid), f32)
    hp_ref[_PAD + W:_PAD + W + R, :] = fc1(x_ref)        # fc1 straight into hp
    hp_ref[_PAD + 2 * W + R:2 * _PAD + 2 * W + R, :] = jnp.zeros((_PAD, Chid), f32)

    @pl.when(t == 0)                      # image top border -> zero halo row
    def _():
        hp_ref[_PAD:_PAD + W, :] = jnp.zeros((W, Chid), f32)

    @pl.when(t != 0)                      # recompute fc1 of the row above the tile
    def _():
        hp_ref[_PAD:_PAD + W, :] = fc1(xt_ref)

    @pl.when(t == T - 1)                  # image bottom border -> zero halo row
    def _():
        hp_ref[_PAD + W + R:_PAD + 2 * W + R, :] = jnp.zeros((W, Chid), f32)

    @pl.when(t != T - 1)                  # recompute fc1 of the row below the tile
    def _():
        hp_ref[_PAD + W + R:_PAD + 2 * W + R, :] = fc1(xb_ref)

    # ---- depthwise 3x3: 9 shifted slices of hp times per-channel tap weights.
    # Row shifts come from the halo layout; the dj=+-1 column wrap / border
    # columns are fixed with two factored column masks (not 9 per-tap masks).
    def tap(k, dj):                       # h shifted by (k-1) image rows, dj cols
        s = _PAD + k * W + dj
        return hp_ref[s:s + R, :]

    def wrow(k, dj):                      # per-channel tap weight (1, Chid), row-major 3x3
        i = 1 + k * 3 + (dj + 1)
        return cvec[i:i + 1, :]

    center = tap(0, 0) * wrow(0, 0)
    left = tap(0, -1) * wrow(0, -1)
    right = tap(0, 1) * wrow(0, 1)
    for k in (1, 2):
        center = center + tap(k, 0) * wrow(k, 0)
        left = left + tap(k, -1) * wrow(k, -1)
        right = right + tap(k, 1) * wrow(k, 1)

    masks = m_ref[...]                    # (R, 2) f32: [col != 0, col != W-1]
    acc = (center + left * masks[:, 0:1] + right * masks[:, 1:2]
           + cvec[10:11, :])              # + dwconv bias

    # ---- tanh-form GELU (transcendental on the EUP slot; VALU stays light).
    c0 = 0.7978845608028654               # sqrt(2/pi)
    c1 = 0.044715
    g = 0.5 * acc * (1.0 + jnp.tanh(acc * (c0 * (1.0 + c1 * (acc * acc)))))

    # ---- fc2: bf16 MXU matmul, f32 accumulate, + bias
    out = jnp.dot(g.astype(bf16), w2_ref[...],
                  preferred_element_type=f32) + b2_ref[...]
    o_ref[...] = out.astype(o_ref.dtype)


def mlp_dwconv(x, params, *, H, W, row_tile=None):
    """Fused Mlp forward.  x: (B, N, C_in) with N == H*W (row-major H, W)."""
    B, N, Cin = x.shape
    assert N == H * W
    Chid = params["b1"].shape[0]
    Cout = params["b2"].shape[0]
    assert W % 8 == 0, "kernel assumes the image width is a multiple of 8"

    # Pick a row tile: largest divisor of H with ~<=1K tokens per grid step so the
    # per-step working set stays well inside every chip's scoped VMEM.
    if row_tile is None:
        target = max(1, 1024 // W)
        row_tile = 1
        for d in range(1, H + 1):
            if H % d == 0 and d <= target:
                row_tile = d
    TH = row_tile
    assert H % TH == 0, "row_tile must divide H"
    T = H // TH
    R = TH * W                            # tokens per grid step

    x2 = x.reshape(B * N, Cin)            # stays f32; cast to bf16 inside the kernel

    # NOTE: in a real model these weight transposes/casts are done once outside.
    w1_t = params["w1"].T.astype(jnp.bfloat16)            # (Cin, Chid)
    w2_t = params["w2"].T.astype(jnp.bfloat16)            # (Chid, Cout)
    wdw = params["w_dw"].reshape(Chid, 9).T               # (9, Chid), row-major 3x3
    cvec = jnp.concatenate([params["b1"][None, :], wdw,
                            params["b_dw"][None, :]], axis=0).astype(jnp.float32)
    b2 = params["b2"].reshape(1, Cout).astype(jnp.float32)

    # Column-border masks for the dj=-1 / dj=+1 tap groups (same for every tile).
    c_idx = jnp.arange(R) % W
    masks = jnp.stack([c_idx != 0, c_idx != W - 1], axis=1).astype(jnp.float32)

    kernel = partial(_mlp_kernel, W=W, R=R, T=T)

    def const(shape):                     # broadcast input, constant block index
        return pl.BlockSpec(shape, lambda b, t, _n=len(shape): (0,) * _n)

    out = pl.pallas_call(
        kernel,
        out_shape=jax.ShapeDtypeStruct((B * N, Cout), x.dtype),
        grid=(B, T),
        in_specs=[
            # tile of TH image rows
            pl.BlockSpec((R, Cin), lambda b, t: (b * T + t, 0)),
            # halo image row above the tile (clamped at the top; zeroed in-kernel)
            pl.BlockSpec((W, Cin),
                         lambda b, t: (b * H + jnp.maximum(t * TH - 1, 0), 0)),
            # halo image row below the tile (clamped at the bottom; zeroed in-kernel)
            pl.BlockSpec((W, Cin),
                         lambda b, t: (b * H + jnp.minimum((t + 1) * TH, H - 1), 0)),
            const((Cin, Chid)),           # fc1 weight^T (bf16)
            const((Chid, Cout)),          # fc2 weight^T (bf16)
            const((11, Chid)),            # packed per-channel vectors
            const((1, Cout)),             # fc2 bias
            const((R, 2)),                # column-border masks
        ],
        out_specs=pl.BlockSpec((R, Cout), lambda b, t: (b * T + t, 0)),
        scratch_shapes=[pltpu.VMEM((2 * _PAD + 2 * W + R, Chid), jnp.float32)],
        compiler_params=pltpu.CompilerParams(
            dimension_semantics=("parallel", "parallel"),
            vmem_limit_bytes=48 * 1024 * 1024),
    )(x2, x2, x2, w1_t, w2_t, cvec, b2, masks)
    return out.reshape(B, N, Cout)


def reference(x, params, *, H, W):
    """Pure-JAX mirror of the PyTorch Mlp forward (exact-erf GELU)."""
    B, N, Cin = x.shape
    Chid = params["b1"].shape[0]
    h = x @ params["w1"].T + params["b1"]                       # fc1
    img = h.transpose(0, 2, 1).reshape(B, Chid, H, W)
    dw = lax.conv_general_dilated(
        img, params["w_dw"].reshape(Chid, 1, 3, 3),
        window_strides=(1, 1), padding="SAME",
        feature_group_count=Chid,
        dimension_numbers=("NCHW", "OIHW", "NCHW"))             # depthwise 3x3
    dw = dw + params["b_dw"][None, :, None, None]
    h = dw.reshape(B, Chid, N).transpose(0, 2, 1)
    h = jax.nn.gelu(h, approximate=False)                       # exact GELU
    return h @ params["w2"].T + params["b2"]                    # fc2 (drop=0.0 -> identity)


if __name__ == "__main__":
    B = 2
    H = W = 16
    N = H * W                        # 256 tokens
    in_features = 64
    hidden_features = 256            # 4x expansion, as in the decode head
    out_features = 64                # out_features defaults to in_features

    key = jax.random.PRNGKey(0)
    ks = jax.random.split(key, 7)
    params = {
        # nn.Linear: trunc_normal(std=0.02) weights. Biases are randomized here
        # (module init is 0) so the check exercises the bias paths.
        "w1": 0.02 * jax.random.truncated_normal(ks[0], -2.0, 2.0,
                                                 (hidden_features, in_features), jnp.float32),
        "b1": 0.02 * jax.random.normal(ks[1], (hidden_features,), jnp.float32),
        "w2": 0.02 * jax.random.truncated_normal(ks[2], -2.0, 2.0,
                                                 (out_features, hidden_features), jnp.float32),
        "b2": 0.02 * jax.random.normal(ks[3], (out_features,), jnp.float32),
        # depthwise Conv2d(hidden, hidden, 3, groups=hidden):
        # normal(0, sqrt(2/fan_out)), fan_out = 3*3*hidden/hidden = 9
        "w_dw": math.sqrt(2.0 / 9.0) * jax.random.normal(ks[4],
                                                         (hidden_features, 3, 3), jnp.float32),
        "b_dw": 0.02 * jax.random.normal(ks[5], (hidden_features,), jnp.float32),
    }
    x = jax.random.normal(ks[6], (B, N, in_features), jnp.float32)

    # row_tile=4 -> 4 tiles per image: exercises top/interior/bottom halo paths.
    out = mlp_dwconv(x, params, H=H, W=W, row_tile=4)
    out = jax.block_until_ready(out)

    ref = reference(x, params, H=H, W=W)
    # bf16 MXU operands + tanh-form GELU -> normalized max-error check.
    err = float(jnp.max(jnp.abs(out - ref)) / jnp.max(jnp.abs(ref)))
    assert err < 3e-2, f"normalized max error {err}"
    print("KERNEL_OK")
</pallas_src>

<mosaic_0001>
module attributes {stable_mosaic.version = 11 : i64} {
  func.func @_mlp_kernel(%arg0: i32, %arg1: i32, %arg2: memref<64x64xf32, #tpu.memory_space<vmem>>, %arg3: memref<16x64xf32, #tpu.memory_space<vmem>>, %arg4: memref<16x64xf32, #tpu.memory_space<vmem>>, %arg5: memref<64x256xbf16, #tpu.memory_space<vmem>>, %arg6: memref<256x64xbf16, #tpu.memory_space<vmem>>, %arg7: memref<11x256xf32, #tpu.memory_space<vmem>>, %arg8: memref<1x64xf32, #tpu.memory_space<vmem>>, %arg9: memref<64x2xf32, #tpu.memory_space<vmem>>, %arg10: memref<64x64xf32, #tpu.memory_space<vmem>>, %arg11: memref<112x256xf32, #tpu.memory_space<vmem>>) attributes {dimension_semantics = [#tpu.dimension_semantics<parallel>, #tpu.dimension_semantics<parallel>], iteration_bounds = array<i64: 2, 4>, scalar_prefetch = 0 : i64, scratch_operands = 1 : i64, tpu.core_type = #tpu.core_type<tc>, window_params = [{transform_indices = @transform_0, window_bounds = array<i64: 64, 64>}, {transform_indices = @transform_1, window_bounds = array<i64: 16, 64>}, {transform_indices = @transform_2, window_bounds = array<i64: 16, 64>}, {pipeline_mode = #tpu.pipeline_mode<synchronous>, transform_indices = @transform_3, window_bounds = array<i64: 64, 256>}, {pipeline_mode = #tpu.pipeline_mode<synchronous>, transform_indices = @transform_4, window_bounds = array<i64: 256, 64>}, {pipeline_mode = #tpu.pipeline_mode<synchronous>, transform_indices = @transform_5, window_bounds = array<i64: 11, 256>}, {pipeline_mode = #tpu.pipeline_mode<synchronous>, transform_indices = @transform_6, window_bounds = array<i64: 1, 64>}, {pipeline_mode = #tpu.pipeline_mode<synchronous>, transform_indices = @transform_7, window_bounds = array<i64: 64, 2>}, {transform_indices = @transform_8, window_bounds = array<i64: 64, 64>}]} {
    %c0 = arith.constant 0 : index
    %c0_0 = arith.constant 0 : index
    %0 = vector.load %arg5[%c0, %c0_0] : memref<64x256xbf16, #tpu.memory_space<vmem>>, vector<64x256xbf16>
    %c0_1 = arith.constant 0 : index
    %c0_2 = arith.constant 0 : index
    %1 = vector.load %arg7[%c0_1, %c0_2] : memref<11x256xf32, #tpu.memory_space<vmem>>, vector<11x256xf32>
    %2 = vector.extract_strided_slice %1 {offsets = [0, 0], sizes = [1, 256], strides = [1, 1]} : vector<11x256xf32> to vector<1x256xf32>
    %cst = arith.constant 0.000000e+00 : f32
    %3 = vector.broadcast %cst : f32 to vector<8x256xf32>
    %c0_3 = arith.constant 0 : index
    %c0_4 = arith.constant 0 : index
    %4 = vector.load %arg11[%c0_3, %c0_4] : memref<112x256xf32, #tpu.memory_space<vmem>>, vector<8x256xf32>
    tpu.vector_store %arg11[%c0_3, %c0_4], %3 {strides = array<i32>} : memref<112x256xf32, #tpu.memory_space<vmem>>, vector<8x256xf32>,
    %c0_5 = arith.constant 0 : index
    %c0_6 = arith.constant 0 : index
    %5 = vector.load %arg2[%c0_5, %c0_6] : memref<64x64xf32, #tpu.memory_space<vmem>>, vector<64x64xf32>
    %6 = arith.truncf %5 : vector<64x64xf32> to vector<64x64xbf16>
    %cst_7 = arith.constant dense<0.000000e+00> : vector<64x256xf32>
    %7 = tpu.matmul %6, %0, %cst_7 {dimension_numbers = #tpu.dot_dimension_numbers<[1], [0], [0], [1], [0, 0, 1, 1], [], []>} : vector<64x64xbf16>, vector<64x256xbf16>, vector<64x256xf32> -> vector<64x256xf32>
    %8 = vector.broadcast %2 : vector<1x256xf32> to vector<64x256xf32>
    %9 = arith.addf %7, %8 : vector<64x256xf32>
    %c24 = arith.constant 24 : index
    %c0_8 = arith.constant 0 : index
    %10 = vector.load %arg11[%c24, %c0_8] : memref<112x256xf32, #tpu.memory_space<vmem>>, vector<64x256xf32>
    tpu.vector_store %arg11[%c24, %c0_8], %9 {strides = array<i32>} : memref<112x256xf32, #tpu.memory_space<vmem>>, vector<64x256xf32>,
    %cst_9 = arith.constant 0.000000e+00 : f32
    %11 = vector.broadcast %cst_9 : f32 to vector<8x256xf32>
    %c104 = arith.constant 104 : index
    %c0_10 = arith.constant 0 : index
    %12 = vector.load %arg11[%c104, %c0_10] : memref<112x256xf32, #tpu.memory_space<vmem>>, vector<8x256xf32>
    tpu.vector_store %arg11[%c104, %c0_10], %11 {strides = array<i32>} : memref<112x256xf32, #tpu.memory_space<vmem>>, vector<8x256xf32>,
    %c0_i32 = arith.constant 0 : i32
    %13 = arith.cmpi eq, %arg1, %c0_i32 : i32
    %14 = arith.extui %13 : i1 to i32
    %c0_i32_11 = arith.constant 0 : i32
    %15 = arith.cmpi ne, %14, %c0_i32_11 : i32
    scf.if %15 {
      %cst_41 = arith.constant 0.000000e+00 : f32
      %100 = vector.broadcast %cst_41 : f32 to vector<16x256xf32>
      %c8_42 = arith.constant 8 : index
      %c0_43 = arith.constant 0 : index
      %101 = vector.load %arg11[%c8_42, %c0_43] : memref<112x256xf32, #tpu.memory_space<vmem>>, vector<16x256xf32>
      tpu.vector_store %arg11[%c8_42, %c0_43], %100 {strides = array<i32>} : memref<112x256xf32, #tpu.memory_space<vmem>>, vector<16x256xf32>,
    } else {
    }
    %c0_i32_12 = arith.constant 0 : i32
    %16 = arith.cmpi ne, %arg1, %c0_i32_12 : i32
    %17 = arith.extui %16 : i1 to i32
    %c0_i32_13 = arith.constant 0 : i32
    %18 = arith.cmpi ne, %17, %c0_i32_13 : i32
    scf.if %18 {
      %c0_41 = arith.constant 0 : index
      %c0_42 = arith.constant 0 : index
      %100 = vector.load %arg3[%c0_41, %c0_42] : memref<16x64xf32, #tpu.memory_space<vmem>>, vector<16x64xf32>
      %101 = arith.truncf %100 : vector<16x64xf32> to vector<16x64xbf16>
      %cst_43 = arith.constant dense<0.000000e+00> : vector<16x256xf32>
      %102 = tpu.matmul %101, %0, %cst_43 {dimension_numbers = #tpu.dot_dimension_numbers<[1], [0], [0], [1], [0, 0, 1, 1], [], []>} : vector<16x64xbf16>, vector<64x256xbf16>, vector<16x256xf32> -> vector<16x256xf32>
      %103 = vector.broadcast %2 : vector<1x256xf32> to vector<16x256xf32>
      %104 = arith.addf %102, %103 : vector<16x256xf32>
      %c8_44 = arith.constant 8 : index
      %c0_45 = arith.constant 0 : index
      %105 = vector.load %arg11[%c8_44, %c0_45] : memref<112x256xf32, #tpu.memory_space<vmem>>, vector<16x256xf32>
      tpu.vector_store %arg11[%c8_44, %c0_45], %104 {strides = array<i32>} : memref<112x256xf32, #tpu.memory_space<vmem>>, vector<16x256xf32>,
    } else {
    }
    %c3_i32 = arith.constant 3 : i32
    %19 = arith.cmpi eq, %arg1, %c3_i32 : i32
    %20 = arith.extui %19 : i1 to i32
    %c0_i32_14 = arith.constant 0 : i32
    %21 = arith.cmpi ne, %20, %c0_i32_14 : i32
    scf.if %21 {
      %cst_41 = arith.constant 0.000000e+00 : f32
      %100 = vector.broadcast %cst_41 : f32 to vector<16x256xf32>
      %c88 = arith.constant 88 : index
      %c0_42 = arith.constant 0 : index
      %101 = vector.load %arg11[%c88, %c0_42] : memref<112x256xf32, #tpu.memory_space<vmem>>, vector<16x256xf32>
      tpu.vector_store %arg11[%c88, %c0_42], %100 {strides = array<i32>} : memref<112x256xf32, #tpu.memory_space<vmem>>, vector<16x256xf32>,
    } else {
    }
    %c3_i32_15 = arith.constant 3 : i32
    %22 = arith.cmpi ne, %arg1, %c3_i32_15 : i32
    %23 = arith.extui %22 : i1 to i32
    %c0_i32_16 = arith.constant 0 : i32
    %24 = arith.cmpi ne, %23, %c0_i32_16 : i32
    scf.if %24 {
      %c0_41 = arith.constant 0 : index
      %c0_42 = arith.constant 0 : index
      %100 = vector.load %arg4[%c0_41, %c0_42] : memref<16x64xf32, #tpu.memory_space<vmem>>, vector<16x64xf32>
      %101 = arith.truncf %100 : vector<16x64xf32> to vector<16x64xbf16>
      %cst_43 = arith.constant dense<0.000000e+00> : vector<16x256xf32>
      %102 = tpu.matmul %101, %0, %cst_43 {dimension_numbers = #tpu.dot_dimension_numbers<[1], [0], [0], [1], [0, 0, 1, 1], [], []>} : vector<16x64xbf16>, vector<64x256xbf16>, vector<16x256xf32> -> vector<16x256xf32>
      %103 = vector.broadcast %2 : vector<1x256xf32> to vector<16x256xf32>
      %104 = arith.addf %102, %103 : vector<16x256xf32>
      %c88 = arith.constant 88 : index
      %c0_44 = arith.constant 0 : index
      %105 = vector.load %arg11[%c88, %c0_44] : memref<112x256xf32, #tpu.memory_space<vmem>>, vector<16x256xf32>
      tpu.vector_store %arg11[%c88, %c0_44], %104 {strides = array<i32>} : memref<112x256xf32, #tpu.memory_space<vmem>>, vector<16x256xf32>,
    } else {
    }
    %c8 = arith.constant 8 : index
    %c0_17 = arith.constant 0 : index
    %25 = vector.load %arg11[%c8, %c0_17] : memref<112x256xf32, #tpu.memory_space<vmem>>, vector<64x256xf32>
    %26 = vector.extract_strided_slice %1 {offsets = [2, 0], sizes = [1, 256], strides = [1, 1]} : vector<11x256xf32> to vector<1x256xf32>
    %27 = vector.broadcast %26 : vector<1x256xf32> to vector<64x256xf32>
    %28 = arith.mulf %25, %27 : vector<64x256xf32>
    %c7 = arith.constant 7 : index
    %c0_18 = arith.constant 0 : index
    %29 = vector.load %arg11[%c7, %c0_18] : memref<112x256xf32, #tpu.memory_space<vmem>>, vector<64x256xf32>
    %30 = vector.extract_strided_slice %1 {offsets = [1, 0], sizes = [1, 256], strides = [1, 1]} : vector<11x256xf32> to vector<1x256xf32>
    %31 = vector.broadcast %30 : vector<1x256xf32> to vector<64x256xf32>
    %32 = arith.mulf %29, %31 : vector<64x256xf32>
    %c9 = arith.constant 9 : index
    %c0_19 = arith.constant 0 : index
    %33 = vector.load %arg11[%c9, %c0_19] : memref<112x256xf32, #tpu.memory_space<vmem>>, vector<64x256xf32>
    %34 = vector.extract_strided_slice %1 {offsets = [3, 0], sizes = [1, 256], strides = [1, 1]} : vector<11x256xf32> to vector<1x256xf32>
    %35 = vector.broadcast %34 : vector<1x256xf32> to vector<64x256xf32>
    %36 = arith.mulf %33, %35 : vector<64x256xf32>
    %c24_20 = arith.constant 24 : index
    %c0_21 = arith.constant 0 : index
    %37 = vector.load %arg11[%c24_20, %c0_21] : memref<112x256xf32, #tpu.memory_space<vmem>>, vector<64x256xf32>
    %38 = vector.extract_strided_slice %1 {offsets = [5, 0], sizes = [1, 256], strides = [1, 1]} : vector<11x256xf32> to vector<1x256xf32>
    %39 = vector.broadcast %38 : vector<1x256xf32> to vector<64x256xf32>
    %40 = arith.mulf %37, %39 : vector<64x256xf32>
    %41 = arith.addf %28, %40 : vector<64x256xf32>
    %c23 = arith.constant 23 : index
    %c0_22 = arith.constant 0 : index
    %42 = vector.load %arg11[%c23, %c0_22] : memref<112x256xf32, #tpu.memory_space<vmem>>, vector<64x256xf32>
    %43 = vector.extract_strided_slice %1 {offsets = [4, 0], sizes = [1, 256], strides = [1, 1]} : vector<11x256xf32> to vector<1x256xf32>
    %44 = vector.broadcast %43 : vector<1x256xf32> to vector<64x256xf32>
    %45 = arith.mulf %42, %44 : vector<64x256xf32>
    %46 = arith.addf %32, %45 : vector<64x256xf32>
    %c25 = arith.constant 25 : index
    %c0_23 = arith.constant 0 : index
    %47 = vector.load %arg11[%c25, %c0_23] : memref<112x256xf32, #tpu.memory_space<vmem>>, vector<64x256xf32>
    %48 = vector.extract_strided_slice %1 {offsets = [6, 0], sizes = [1, 256], strides = [1, 1]} : vector<11x256xf32> to vector<1x256xf32>
    %49 = vector.broadcast %48 : vector<1x256xf32> to vector<64x256xf32>
    %50 = arith.mulf %47, %49 : vector<64x256xf32>
    %51 = arith.addf %36, %50 : vector<64x256xf32>
    %c40 = arith.constant 40 : index
    %c0_24 = arith.constant 0 : index
    %52 = vector.load %arg11[%c40, %c0_24] : memref<112x256xf32, #tpu.memory_space<vmem>>, vector<64x256xf32>
    %53 = vector.extract_strided_slice %1 {offsets = [8, 0], sizes = [1, 256], strides = [1, 1]} : vector<11x256xf32> to vector<1x256xf32>
    %54 = vector.broadcast %53 : vector<1x256xf32> to vector<64x256xf32>
    %55 = arith.mulf %52, %54 : vector<64x256xf32>
    %56 = arith.addf %41, %55 : vector<64x256xf32>
    %c39 = arith.constant 39 : index
    %c0_25 = arith.constant 0 : index
    %57 = vector.load %arg11[%c39, %c0_25] : memref<112x256xf32, #tpu.memory_space<vmem>>, vector<64x256xf32>
    %58 = vector.extract_strided_slice %1 {offsets = [7, 0], sizes = [1, 256], strides = [1, 1]} : vector<11x256xf32> to vector<1x256xf32>
    %59 = vector.broadcast %58 : vector<1x256xf32> to vector<64x256xf32>
    %60 = arith.mulf %57, %59 : vector<64x256xf32>
    %61 = arith.addf %46, %60 : vector<64x256xf32>
    %c41 = arith.constant 41 : index
    %c0_26 = arith.constant 0 : index
    %62 = vector.load %arg11[%c41, %c0_26] : memref<112x256xf32, #tpu.memory_space<vmem>>, vector<64x256xf32>
    %63 = vector.extract_strided_slice %1 {offsets = [9, 0], sizes = [1, 256], strides = [1, 1]} : vector<11x256xf32> to vector<1x256xf32>
    %64 = vector.broadcast %63 : vector<1x256xf32> to vector<64x256xf32>
    %65 = arith.mulf %62, %64 : vector<64x256xf32>
    %66 = arith.addf %51, %65 : vector<64x256xf32>
    %c0_27 = arith.constant 0 : index
    %c0_28 = arith.constant 0 : index
    %67 = vector.load %arg9[%c0_27, %c0_28] : memref<64x2xf32, #tpu.memory_space<vmem>>, vector<64x2xf32>
    %68 = vector.extract_strided_slice %67 {offsets = [0, 0], sizes = [64, 1], strides = [1, 1]} : vector<64x2xf32> to vector<64x1xf32>
    %69 = vector.broadcast %68 : vector<64x1xf32> to vector<64x256xf32>
    %70 = arith.mulf %61, %69 : vector<64x256xf32>
    %71 = arith.addf %56, %70 : vector<64x256xf32>
    %72 = vector.extract_strided_slice %67 {offsets = [0, 1], sizes = [64, 1], strides = [1, 1]} : vector<64x2xf32> to vector<64x1xf32>
    %73 = vector.broadcast %72 : vector<64x1xf32> to vector<64x256xf32>
    %74 = arith.mulf %66, %73 : vector<64x256xf32>
    %75 = arith.addf %71, %74 : vector<64x256xf32>
    %76 = vector.extract_strided_slice %1 {offsets = [10, 0], sizes = [1, 256], strides = [1, 1]} : vector<11x256xf32> to vector<1x256xf32>
    %77 = vector.broadcast %76 : vector<1x256xf32> to vector<64x256xf32>
    %78 = arith.addf %75, %77 : vector<64x256xf32>
    %cst_29 = arith.constant 5.000000e-01 : f32
    %79 = vector.broadcast %cst_29 : f32 to vector<64x256xf32>
    %80 = arith.mulf %79, %78 : vector<64x256xf32>
    %81 = arith.mulf %78, %78 : vector<64x256xf32>
    %cst_30 = arith.constant 4.471500e-02 : f32
    %82 = vector.broadcast %cst_30 : f32 to vector<64x256xf32>
    %83 = arith.mulf %82, %81 : vector<64x256xf32>
    %cst_31 = arith.constant 1.000000e+00 : f32
    %84 = vector.broadcast %cst_31 : f32 to vector<64x256xf32>
    %85 = arith.addf %84, %83 : vector<64x256xf32>
    %cst_32 = arith.constant 0.797884583 : f32
    %86 = vector.broadcast %cst_32 : f32 to vector<64x256xf32>
    %87 = arith.mulf %86, %85 : vector<64x256xf32>
    %88 = arith.mulf %78, %87 : vector<64x256xf32>
    %89 = math.tanh %88 : vector<64x256xf32>
    %cst_33 = arith.constant 1.000000e+00 : f32
    %90 = vector.broadcast %cst_33 : f32 to vector<64x256xf32>
    %91 = arith.addf %90, %89 : vector<64x256xf32>
    %92 = arith.mulf %80, %91 : vector<64x256xf32>
    %93 = arith.truncf %92 : vector<64x256xf32> to vector<64x256xbf16>
    %c0_34 = arith.constant 0 : index
    %c0_35 = arith.constant 0 : index
    %94 = vector.load %arg6[%c0_34, %c0_35] : memref<256x64xbf16, #tpu.memory_space<vmem>>, vector<256x64xbf16>
    %cst_36 = arith.constant dense<0.000000e+00> : vector<64x64xf32>
    %95 = tpu.matmul %93, %94, %cst_36 {dimension_numbers = #tpu.dot_dimension_numbers<[1], [0], [0], [1], [0, 0, 1, 1], [], []>} : vector<64x256xbf16>, vector<256x64xbf16>, vector<64x64xf32> -> vector<64x64xf32>
    %c0_37 = arith.constant 0 : index
    %c0_38 = arith.constant 0 : index
    %96 = vector.load %arg8[%c0_37, %c0_38] : memref<1x64xf32, #tpu.memory_space<vmem>>, vector<1x64xf32>
    %97 = vector.broadcast %96 : vector<1x64xf32> to vector<64x64xf32>
    %98 = arith.addf %95, %97 : vector<64x64xf32>
    %c0_39 = arith.constant 0 : index
    %c0_40 = arith.constant 0 : index
    %99 = vector.load %arg10[%c0_39, %c0_40] : memref<64x64xf32, #tpu.memory_space<vmem>>, vector<64x64xf32>
    tpu.vector_store %arg10[%c0_39, %c0_40], %98 {strides = array<i32>} : memref<64x64xf32, #tpu.memory_space<vmem>>, vector<64x64xf32>,
    return
  }
  func.func @transform_0(%arg0: i32, %arg1: i32) -> (i32, i32) {
    %c4_i32 = arith.constant 4 : i32
    %0 = arith.muli %arg0, %c4_i32 : i32
    %1 = arith.addi %0, %arg1 : i32
    %c0_i32 = arith.constant 0 : i32
    %c0_i32_0 = arith.constant 0 : i32
    return %1, %c0_i32 : i32, i32
  }
  func.func @transform_1(%arg0: i32, %arg1: i32) -> (i32, i32) {
    %c16_i32 = arith.constant 16 : i32
    %0 = arith.muli %arg0, %c16_i32 : i32
    %c4_i32 = arith.constant 4 : i32
    %1 = arith.muli %arg1, %c4_i32 : i32
    %c1_i32 = arith.constant 1 : i32
    %2 = arith.subi %1, %c1_i32 : i32
    %c0_i32 = arith.constant 0 : i32
    %3 = arith.maxsi %2, %c0_i32 : i32
    %4 = arith.addi %0, %3 : i32
    %c0_i32_0 = arith.constant 0 : i32
    %c0_i32_1 = arith.constant 0 : i32
    return %4, %c0_i32_0 : i32, i32
  }
  func.func @transform_2(%arg0: i32, %arg1: i32) -> (i32, i32) {
    %c16_i32 = arith.constant 16 : i32
    %0 = arith.muli %arg0, %c16_i32 : i32
    %c1_i32 = arith.constant 1 : i32
    %1 = arith.addi %arg1, %c1_i32 : i32
    %c4_i32 = arith.constant 4 : i32
    %2 = arith.muli %1, %c4_i32 : i32
    %c15_i32 = arith.constant 15 : i32
    %3 = arith.minsi %2, %c15_i32 : i32
    %4 = arith.addi %0, %3 : i32
    %c0_i32 = arith.constant 0 : i32
    %c0_i32_0 = arith.constant 0 : i32
    return %4, %c0_i32 : i32, i32
  }
  func.func @transform_3(%arg0: i32, %arg1: i32) -> (i32, i32) {
    %c0_i32 = arith.constant 0 : i32
    %c0_i32_0 = arith.constant 0 : i32
    %c0_i32_1 = arith.constant 0 : i32
    return %c0_i32, %c0_i32_0 : i32, i32
  }
  func.func @transform_4(%arg0: i32, %arg1: i32) -> (i32, i32) {
    %c0_i32 = arith.constant 0 : i32
    %c0_i32_0 = arith.constant 0 : i32
    %c0_i32_1 = arith.constant 0 : i32
    return %c0_i32, %c0_i32_0 : i32, i32
  }
  func.func @transform_5(%arg0: i32, %arg1: i32) -> (i32, i32) {
    %c0_i32 = arith.constant 0 : i32
    %c0_i32_0 = arith.constant 0 : i32
    %c0_i32_1 = arith.constant 0 : i32
    return %c0_i32, %c0_i32_0 : i32, i32
  }
  func.func @transform_6(%arg0: i32, %arg1: i32) -> (i32, i32) {
    %c0_i32 = arith.constant 0 : i32
    %c0_i32_0 = arith.constant 0 : i32
    %c0_i32_1 = arith.constant 0 : i32
    return %c0_i32, %c0_i32_0 : i32, i32
  }
  func.func @transform_7(%arg0: i32, %arg1: i32) -> (i32, i32) {
    %c0_i32 = arith.constant 0 : i32
    %c0_i32_0 = arith.constant 0 : i32
    %c0_i32_1 = arith.constant 0 : i32
    return %c0_i32, %c0_i32_0 : i32, i32
  }
  func.func @transform_8(%arg0: i32, %arg1: i32) -> (i32, i32) {
    %c4_i32 = arith.constant 4 : i32
    %0 = arith.muli %arg0, %c4_i32 : i32
    %1 = arith.addi %0, %arg1 : i32
    %c0_i32 = arith.constant 0 : i32
    %c0_i32_0 = arith.constant 0 : i32
    return %1, %c0_i32 : i32, i32
  }
}

</mosaic_0001>

<bundles_post_ra>
// kernel: tpu_custom_call.1
= control target key start
LH: loop header
LB: loop body
LE: loop exit
PB: predicated region body
PF: predicated region fallthrough
CT: control target
= control target key end

     0   :  { %s2321_s27 = smov 0   ;;  %s2323_s28 = smov 0   ;;  %s3435_s0 = inlined_call_operand.vmem [shape: f32[512,64], index: 0, kind: input, shape index: {}]   ;;  %s3436_s1 = inlined_call_operand.vmem [shape: f32[512,64], index: 1, kind: input, shape index: {}]   ;;  %s3437_s2 = inlined_call_operand.vmem [shape: f32[512,64], index: 2, kind: input, shape index: {}]   ;;  %s3438_s3 = inlined_call_operand.vmem [shape: bf16[64,256], index: 3, kind: input, shape index: {}]   ;;  %s3439_s4 = inlined_call_operand.vmem [shape: bf16[256,64], index: 4, kind: input, shape index: {}]   ;;  %s3440_s5 = inlined_call_operand.vmem [shape: f32[11,256], index: 5, kind: input, shape index: {}]   ;;  %s3441_s6 = inlined_call_operand.vmem [shape: f32[1,64], index: 6, kind: input, shape index: {}]   ;;  %s3442_s7 = inlined_call_operand.vmem [shape: f32[64,2], index: 7, kind: input, shape index: {}]   ;;  %s3443_s8 = inlined_call_operand.vmem [shape: f32[512,64], index: 8, kind: output, shape index: {}]  }
   0x1   :  { %s2325_s29 = smov 0   ;;  %s2327_s30 = smov 0  }
   0x2   :  { %s2329_s9 = smov 0  }
   0x3 LB: > { %s27_s10 = sadd.s32 1, %s2259_s29  ;;  %s30_s11 = sadd.s32 1, %s2263_s30  ;;  %s2267_s9 = sphi %s2329_s9, %s18_s9   ;;  %s2263_s30 = sphi %s2327_s30, %s3575_s30   ;;  %s2259_s29 = sphi %s2325_s29, %s3574_s29   ;;  %s2255_s28 = sphi %s2323_s28, %s3573_s28   ;;  %s2251_s27 = sphi %s2321_s27, %s3572_s27  }
   0x4   : > { %p28_p0 = scmp.ge.s32.totalorder %s27_s10, 4  ;;  %p1994_p1 = scmp.ge.s32.totalorder %s2267_s9, 1 }
   0x5   : > { %p357_p2 = scmp.lt.s32.totalorder %s2267_s9, 9 }
   0x6   : > { %s3577_s10 = smov (%p28_p0, %s27_s10), 0  ;;  %s3579_s11 = smov (!%p28_p0, %s30_s11), %s2263_s30 }
   0x7   : > { %p358_p3 = pnand %p1994_p1, %p357_p2  ;;  %p32_p4 = scmp.ge.s32.totalorder %s3579_s11, 2 }
   0x9   : > { %s3581_s11 = smov (%p32_p4, %s3579_s11), 0  ;;  %361 = sbr.rel (%p358_p3) target bundleno = 1193 (0x4a9), region = 52 }
  0x10   : > { %s1999_s12 = sshll.u32 %s2251_s27, 2  ;;  %v2359_v0 = vld [vmem:[%s3440_s5 + $0x10] sm:$0x7]  ;;  %v2364_v1 = vld [vmem:[%s3440_s5 + $0x18] sm:$0x7]  ;;  %v2269_v2 = vmov 0.0   ;;  %v500_v24 = vlaneseq }
  0x11   : > { %3474 = vst [vmem:[#allocation3_spill] sm:$0xff] %v2359_v0  ;;  %s2000_s15 = sadd.s32 4294967295, %s1999_s12  ;;  %s2052_s16 = sadd.s32 4, %s1999_s12  ;;  %3475 = vst [vmem:[#allocation4_spill] sm:$0xff] %v2364_v1  ;;  %v2369_v3 = vld [vmem:[%s3438_s3 + $0x4] ss:$8 sps:$4 sm:$0xff]  }
  0x12   : > { %p430_p5 = scmp.gt.s32.totalorder %s2000_s15, 0  ;;  %p448_p6 = scmp.lt.s32.totalorder %s2052_s16, 15  ;;  %486 = vst [vmem:[#allocation2] sm:$0xff] %v2269_v2  ;;  %487 = vst [vmem:[#allocation2 + $0x8] sm:$0xff] %v2269_v2  ;;  %v2374_v4 = vld [vmem:[%s3438_s3] ss:$8 sps:$4 sm:$0xff]   ;;  %561 = vmatprep.subr.bf16.mxu0 %v2369_v3  ;;  %2093 = vmatprep.subr.bf16.mxu1 %v2369_v3 }
  0x13   : > { %650 = vst [vmem:[#allocation2 + $0xd0] sm:$0xff] %v2269_v2  ;;  %651 = vst [vmem:[#allocation2 + $0xd8] sm:$0xff] %v2269_v2  ;;  %s1998_s23 = sshll.u32 %s2255_s28, 4  ;;  %v2380_v5 = vld [vmem:[%s3438_s3 + $0x14] ss:$8 sps:$4 sm:$0xff]   ;;  %562 = vmatpush1.bf16.msra.mxu0 %v2374_v4  ;;  %2097 = vmatpush1.bf16.msra.mxu1 %v2374_v4  ;;  %s1995_s18 = sshll.u32 %s2255_s28, 2 }
  0x14   : > { %s3583_s15 = smov (!%p430_p5, %s2000_s15), 0  ;;  %s3585_s16 = smov (!%p448_p6, %s2052_s16), 15  ;;  %v2389_v6 = vld [vmem:[%s3438_s3 + $0x10] ss:$8 sps:$4 sm:$0xff]   ;;  %563 = vmatprep.subr.bf16.mxu0 %v2380_v5  ;;  %2094 = vmatprep.subr.bf16.mxu1 %v2380_v5  ;;  %v2396_v7 = vld [vmem:[%s3438_s3 + $0x24] ss:$8 sps:$4 sm:$0xff]  }
  0x15   : > { %s432_s13 = sadd.s32 %s1998_s23, %s3583_s15  ;;  %s450_s20 = sadd.s32 %s1998_s23, %s3585_s16  ;;  %v2270_v8 = vmov 0   ;;  %v2406_v9 = vld [vmem:[%s3438_s3 + $0x20] ss:$8 sps:$4 sm:$0xff]   ;;  %v2414_v10 = vld [vmem:[%s3438_s3 + $0x34] ss:$8 sps:$4 sm:$0xff]   ;;  %vm548_vm0 = vcmask 523264  }
  0x16   : > { %s2001_s19 = sshll.u32 %s432_s13, 1  ;;  %593 = vmatprep.mubr.bf16.mxu0 %v2270_v8  ;;  %613 = vmatprep.mubr.bf16.mxu1 %v2270_v8  ;;  %s2005_s15 = sshll.u32 %s450_s20, 1  ;;  %v2426_v11 = vld [vmem:[%s3438_s3 + $0x30] ss:$8 sps:$4 sm:$0xff]   ;;  %v2451_v25 = vshrl.u32 %v500_v24, 7  ;;  %v2459_v27 = vld [vmem:[%s3440_s5] sm:$0xff] }
  0x17   : > { %p434_p7 = scmp.lt.s32.totalorder %s2001_s19, 63  ;;  %p452_p8 = scmp.lt.s32.totalorder %s2005_s15, 63  ;;  %564 = vmatpush1.bf16.msra.mxu0 %v2389_v6  ;;  %2098 = vmatpush1.bf16.msra.mxu1 %v2389_v6  ;;  %v2464_v28 = vld [vmem:[%s3440_s5 + $0x8] sm:$0xff] }
  0x18   : > { %s418_s28 = sadd.s32 %s2251_s27, %s1995_s18  ;;  %565 = vmatprep.subr.bf16.mxu0 %v2396_v7  ;;  %2095 = vmatprep.subr.bf16.mxu1 %v2396_v7  ;;  %v2454_v26 = vsub.s32 0, %v2451_v25  ;;  %p2022_p10 = scmp.ne.s32.totalorder %s2251_s27, 0 }
  0x19   : > { %s3587_s19 = smov (!%p434_p7, %s2001_s19), 63  ;;  %s3589_s15 = smov (!%p452_p8, %s2005_s15), 63 }
  0x1a   : > { %s2002_s24 = sshll.u32 %s3587_s19, 3  ;;  %s1996_s25 = sshll.u32 %s418_s28, 3  ;;  %v2468_v29 = vrot.slane %v2459_v27, %v2454_v26  ;;  %v2472_v30 = vrot.slane %v2464_v28, %v2454_v26  ;;  %v2271_v63 = vmov (!%p2022_p10), 0.0  }
  0x1b   : > { %s2419_s13 = scalar_lea.vmem %s3436_s1, %s2002_s24  ;;  %s2006_s14 = sshll.u32 %s3589_s15, 3  ;;  %566 = vmatpush1.bf16.msra.mxu0 %v2406_v9  ;;  %2099 = vmatpush1.bf16.msra.mxu1 %v2406_v9  ;;  %656 = vst [vmem:[#allocation2 + $0x10] sm:$0xff] (!%p2022_p10), %v2271_v63  ;;  %657 = vst [vmem:[#allocation2 + $0x18] sm:$0xff] (!%p2022_p10), %v2271_v63 }
  0x1c   : > { %s2431_s19 = scalar_lea.vmem %s3437_s2, %s2006_s14  ;;  %567 = vmatprep.subr.bf16.mxu0 %v2414_v10  ;;  %2096 = vmatprep.subr.bf16.mxu1 %v2414_v10  ;;  %p420_p9 = scmp.lt.s32.totalorder %s1996_s25, 63  ;;  %658 = vst [vmem:[#allocation2 + $0x20] sm:$0xff] (!%p2022_p10), %v2271_v63  ;;  %659 = vst [vmem:[#allocation2 + $0x28] sm:$0xff] (!%p2022_p10), %v2271_v63 }
  0x1e   : > { %s3591_s25 = smov (!%p420_p9, %s1996_s25), 63 }
  0x1f   : > { %568 = vmatpush1.bf16.msra.mxu0 %v2426_v11  ;;  %2100 = vmatpush1.bf16.msra.mxu1 %v2426_v11  ;;  %s1997_s15 = sshll.u32 %s3591_s25, 3 }
  0x20   : > { %s423_s16 = scalar_lea.vmem %s3435_s0, %s1997_s15  ;;  %s2443_s26 = scalar_lea.vmem %s3443_s8, %s1997_s15 }
  0x21   : > { %v488_v12 = vld [vmem:[%s423_s16] sm:$0xff]  ;;  %v489_v13 = vld [vmem:[%s423_s16 + $0x8] sm:$0xff]  ;;  %v490_v18 = vld [vmem:[%s423_s16 + $0x10] sm:$0xff] }
  0x22   : > { %v492_v14 = vld [vmem:[%s423_s16 + $0x20] sm:$0xff]  ;;  %v496_v15 = vpack.c.bf16 %v489_v13, %v488_v12  ;;  %v493_v16 = vld [vmem:[%s423_s16 + $0x28] sm:$0xff]  ;;  %v491_v19 = vld [vmem:[%s423_s16 + $0x18] sm:$0xff] }
  0x23   : > { %v498_v17 = vpack.c.bf16 %v493_v16, %v492_v14  ;;  %v494_v20 = vld [vmem:[%s423_s16 + $0x30] sm:$0xff]  ;;  %v495_v21 = vld [vmem:[%s423_s16 + $0x38] sm:$0xff]  ;;  %v497_v22 = vpack.c.bf16 %v491_v19, %v490_v18 }
  0x24   : > { %2018 = vmatmul.mubr.msk.bf16.vlgmr.msra.gmra.mrb[0].mxu0 %vm548_vm0, %v496_v15  ;;  %v499_v23 = vpack.c.bf16 %v495_v21, %v494_v20 }
  0x25   : > { %2020 = vmatmul.mubr.msk.bf16.vlgmr.msra.gmra.mrb[0].mxu1 %vm548_vm0, %v498_v17  ;;  %603 = vmatprep.mubr.bf16.mxu0 %v2270_v8 }
  0x26   : > { %623 = vmatprep.mubr.bf16.mxu1 %v2270_v8 }
  0x2c   : > { %2019 = vmatmul.mubr.msk.bf16.gmra.mrb[4].mxu0 %vm548_vm0, %v497_v22 }
  0x2d   : > { %2021 = vmatmul.mubr.msk.bf16.gmra.mrb[4].mxu1 %vm548_vm0, %v499_v23 }
  0xf7   : > { %v595_v31 = vpop.f32.mrb[0].mxu0 }
  0xf8   : > { %v596_v32 = vadd.f32 %v595_v31, %v2468_v29  ;;  %v615_v33 = vpop.f32.mrb[0].mxu1  ;;  %v597_v34 = vpop.f32.mrb[1].mxu0 }
  0xf9   : > { %v616_v35 = vadd.f32 %v615_v33, %v2468_v29  ;;  %v598_v36 = vadd.f32 %v597_v34, %v2472_v30  ;;  %v617_v37 = vpop.f32.mrb[1].mxu1  ;;  %v599_v38 = vpop.f32.mrb[2].mxu0 }
  0xfa   : > { %634 = vst [vmem:[#allocation2 + $0x30] sm:$0xff] %v596_v32  ;;  %v618_v39 = vadd.f32 %v617_v37, %v2472_v30  ;;  %v600_v40 = vadd.f32 %v599_v38, %v2468_v29  ;;  %v619_v41 = vpop.f32.mrb[2].mxu1  ;;  %v601_v42 = vpop.f32.mrb[3].mxu0 }
  0xfb   : > { %642 = vst [vmem:[#allocation2 + $0x70] sm:$0xff] %v616_v35  ;;  %635 = vst [vmem:[#allocation2 + $0x38] sm:$0xff] %v598_v36  ;;  %v620_v43 = vadd.f32 %v619_v41, %v2468_v29  ;;  %v602_v44 = vadd.f32 %v601_v42, %v2472_v30  ;;  %v621_v45 = vpop.f32.mrb[3].mxu1 }
  0xfc   : > { %643 = vst [vmem:[#allocation2 + $0x78] sm:$0xff] %v618_v39  ;;  %636 = vst [vmem:[#allocation2 + $0x40] sm:$0xff] %v600_v40  ;;  %v622_v46 = vadd.f32 %v621_v45, %v2472_v30 }
  0xfd   : > { %644 = vst [vmem:[#allocation2 + $0x80] sm:$0xff] %v620_v43  ;;  %637 = vst [vmem:[#allocation2 + $0x48] sm:$0xff] %v602_v44 }
  0xfe   : > { %645 = vst [vmem:[#allocation2 + $0x88] sm:$0xff] %v622_v46 }
  0xff   : > { %v605_v47 = vpop.f32.mrb[4].mxu0 }
 0x100   : > { %v606_v48 = vadd.f32 %v605_v47, %v2468_v29  ;;  %v625_v49 = vpop.f32.mrb[4].mxu1  ;;  %v607_v50 = vpop.f32.mrb[5].mxu0  ;;  %655 = sbr.rel (%p2022_p10) target bundleno = 263 (0x107), region = 56 }
 0x101   : > { %v626_v51 = vadd.f32 %v625_v49, %v2468_v29  ;;  %v608_v52 = vadd.f32 %v607_v50, %v2472_v30  ;;  %v627_v53 = vpop.f32.mrb[5].mxu1  ;;  %v609_v54 = vpop.f32.mrb[6].mxu0 }
 0x102   : > { %638 = vst [vmem:[#allocation2 + $0x50] sm:$0xff] %v606_v48  ;;  %v628_v55 = vadd.f32 %v627_v53, %v2472_v30  ;;  %v610_v56 = vadd.f32 %v609_v54, %v2468_v29  ;;  %v629_v57 = vpop.f32.mrb[6].mxu1  ;;  %v611_v58 = vpop.f32.mrb[7].mxu0 }
 0x103   : > { %646 = vst [vmem:[#allocation2 + $0x90] sm:$0xff] %v626_v51  ;;  %639 = vst [vmem:[#allocation2 + $0x58] sm:$0xff] %v608_v52  ;;  %v630_v59 = vadd.f32 %v629_v57, %v2468_v29  ;;  %v612_v60 = vadd.f32 %v611_v58, %v2472_v30  ;;  %v631_v61 = vpop.f32.mrb[7].mxu1 }
 0x104   : > { %647 = vst [vmem:[#allocation2 + $0x98] sm:$0xff] %v628_v55  ;;  %640 = vst [vmem:[#allocation2 + $0x60] sm:$0xff] %v610_v56  ;;  %v632_v62 = vadd.f32 %v631_v61, %v2472_v30 }
 0x105   : > { %648 = vst [vmem:[#allocation2 + $0xa0] sm:$0xff] %v630_v59  ;;  %641 = vst [vmem:[#allocation2 + $0x68] sm:$0xff] %v612_v60 }
 0x106   : > { %649 = vst [vmem:[#allocation2 + $0xa8] sm:$0xff] %v632_v62 }
 0x107 PF: > { %p2023_p11 = scmp.eq.s32.totalorder %s2251_s27, 0 }
 0x108   : > { %670 = vmatprep.subr.bf16.mxu0 (!%p2023_p11), %v2369_v3  ;;  %v2272_v2 = vmov (!%p2023_p11), 0   ;;  %v664_v12 = vld [vmem:[%s2419_s13] sm:$0xff] (!%p2023_p11)  ;;  %v665_v13 = vld [vmem:[%s2419_s13 + $0x8] sm:$0xff] (!%p2023_p11) }
 0x109   : > { %663 = sbr.rel (%p2023_p11) target bundleno = 498 (0x1f2), region = 60  ;;  %671 = vmatpush1.bf16.msra.mxu0 (!%p2023_p11), %v2374_v4  ;;  %702 = vmatprep.mubr.bf16.mxu0 (!%p2023_p11), %v2272_v2  ;;  %v666_v14 = vpack.c.bf16 (!%p2023_p11), %v665_v13, %v664_v12 }
 0x10a   : > { %672 = vmatprep.subr.bf16.mxu0 (!%p2023_p11), %v2380_v5 }
 0x10d   : > { %673 = vmatpush1.bf16.msra.mxu0 (!%p2023_p11), %v2389_v6 }
 0x10e   : > { %674 = vmatprep.subr.bf16.mxu0 (!%p2023_p11), %v2396_v7 }
 0x111   : > { %675 = vmatpush1.bf16.msra.mxu0 %v2406_v9 }
 0x112   : > { %676 = vmatprep.subr.bf16.mxu0 %v2414_v10 }
 0x115   : > { %677 = vmatpush1.bf16.msra.mxu0 %v2426_v11 }
 0x118   : > { %2024 = vmatmul.mubr.msk.bf16.vlgmr.msra.gmra.mrb[0].mxu0 %vm548_vm0, %v666_v14 }
 0x1eb   : > { %v704_v15 = vpop.f32.mrb[0].mxu0 }
 0x1ec   : > { %v705_v16 = vadd.f32 %v704_v15, %v2468_v29  ;;  %v706_v17 = vpop.f32.mrb[1].mxu0 }
 0x1ed   : > { %v707_v18 = vadd.f32 %v706_v17, %v2472_v30  ;;  %v708_v19 = vpop.f32.mrb[2].mxu0 }
 0x1ee   : > { %713 = vst [vmem:[#allocation2 + $0x10] sm:$0xff] %v705_v16  ;;  %v709_v20 = vadd.f32 %v708_v19, %v2468_v29  ;;  %v710_v21 = vpop.f32.mrb[3].mxu0 }
 0x1ef   : > { %714 = vst [vmem:[#allocation2 + $0x18] sm:$0xff] %v707_v18  ;;  %v711_v22 = vadd.f32 %v710_v21, %v2472_v30 }
 0x1f0   : > { %715 = vst [vmem:[#allocation2 + $0x20] sm:$0xff] %v709_v20 }
 0x1f1   : > { %716 = vst [vmem:[#allocation2 + $0x28] sm:$0xff] %v711_v22 }
 0x1f2 PF: > { %p2025_p12 = scmp.ne.s32.totalorder %s2251_s27, 3 }
 0x1f3   : > { %v2273_v23 = vmov (!%p2025_p12), 0.0  }
 0x1f4   : > { %720 = sbr.rel (%p2025_p12) target bundleno = 507 (0x1fb), region = 64  ;;  %721 = vst [vmem:[#allocation2 + $0xb0] sm:$0xff] (!%p2025_p12), %v2273_v23  ;;  %722 = vst [vmem:[#allocation2 + $0xb8] sm:$0xff] (!%p2025_p12), %v2273_v23 }
 0x1f5   : > { %723 = vst [vmem:[#allocation2 + $0xc0] sm:$0xff] (!%p2025_p12), %v2273_v23  ;;  %724 = vst [vmem:[#allocation2 + $0xc8] sm:$0xff] (!%p2025_p12), %v2273_v23 }
 0x1fb PF: > { %p2026_p13 = scmp.eq.s32.totalorder %s2251_s27, 3 }
 0x1fc   : > { %735 = vmatprep.subr.bf16.mxu0 (!%p2026_p13), %v2369_v3  ;;  %v2274_v24 = vmov (!%p2026_p13), 0   ;;  %v729_v31 = vld [vmem:[%s2431_s19] sm:$0xff] (!%p2026_p13)  ;;  %v730_v32 = vld [vmem:[%s2431_s19 + $0x8] sm:$0xff] (!%p2026_p13) }
 0x1fd   : > { %728 = sbr.rel (%p2026_p13) target bundleno = 742 (0x2e6), region = 68  ;;  %736 = vmatpush1.bf16.msra.mxu0 (!%p2026_p13), %v2374_v4  ;;  %767 = vmatprep.mubr.bf16.mxu0 (!%p2026_p13), %v2274_v24  ;;  %v731_v33 = vpack.c.bf16 (!%p2026_p13), %v730_v32, %v729_v31 }
 0x1fe   : > { %737 = vmatprep.subr.bf16.mxu0 (!%p2026_p13), %v2380_v5 }
 0x201   : > { %738 = vmatpush1.bf16.msra.mxu0 (!%p2026_p13), %v2389_v6 }
 0x202   : > { %739 = vmatprep.subr.bf16.mxu0 (!%p2026_p13), %v2396_v7 }
 0x205   : > { %740 = vmatpush1.bf16.msra.mxu0 %v2406_v9 }
 0x206   : > { %741 = vmatprep.subr.bf16.mxu0 %v2414_v10 }
 0x209   : > { %742 = vmatpush1.bf16.msra.mxu0 %v2426_v11 }
 0x20c   : > { %2027 = vmatmul.mubr.msk.bf16.vlgmr.msra.gmra.mrb[0].mxu0 %vm548_vm0, %v731_v33 }
 0x2df   : > { %v769_v3 = vpop.f32.mrb[0].mxu0 }
 0x2e0   : > { %v770_v4 = vadd.f32 %v769_v3, %v2468_v29  ;;  %v771_v34 = vpop.f32.mrb[1].mxu0 }
 0x2e1   : > { %v772_v5 = vadd.f32 %v771_v34, %v2472_v30  ;;  %v773_v6 = vpop.f32.mrb[2].mxu0 }
 0x2e2   : > { %778 = vst [vmem:[#allocation2 + $0xb0] sm:$0xff] %v770_v4  ;;  %v774_v7 = vadd.f32 %v773_v6, %v2468_v29  ;;  %v775_v9 = vpop.f32.mrb[3].mxu0 }
 0x2e3   : > { %779 = vst [vmem:[#allocation2 + $0xb8] sm:$0xff] %v772_v5  ;;  %v776_v35 = vadd.f32 %v775_v9, %v2472_v30 }
 0x2e4   : > { %780 = vst [vmem:[#allocation2 + $0xc0] sm:$0xff] %v774_v7 }
 0x2e5   : > { %781 = vst [vmem:[#allocation2 + $0xc8] sm:$0xff] %v776_v35 }
 0x2e6 PF: > { %2177 = vset.pattern.permute.xlu1 %v2270_v8  ;;  %2176 = vset.pattern.permute.xlu0 %v2270_v8  ;;  %v1178_v10 = vld [vmem:[%s3442_s7 + $0x10] sm:$0xff]  ;;  %v1176_v11 = vld [vmem:[%s3442_s7] sm:$0xff]  ;;  %v1179_v29 = vld [vmem:[%s3442_s7 + $0x18] sm:$0xff]  ;;  %v2275_v39 = vmov 1   ;;  %v2591_v53 = vsub.s32 1, %v2451_v25  ;;  %v932_v54 = vsub.s32 4, %v2451_v25 }
 0x2e7   : > { %1194 = vperm.xlu1 %2177, %v1178_v10   ;;  %1186 = vperm.xlu0 %2176, %v1176_v11   ;;  %v1177_v30 = vld [vmem:[%s3442_s7 + $0x8] sm:$0xff]  ;;  %v1180_v37 = vld [vmem:[%s3442_s7 + $0x20] sm:$0xff]  ;;  %v1182_v38 = vld [vmem:[%s3442_s7 + $0x30] sm:$0xff]  ;;  %v1072_v56 = vsub.s32 7, %v2451_v25  ;;  %v2643_v4 = vsub.s32 2, %v2451_v25  ;;  %v888_v9 = vsub.s32 5, %v2451_v25 }
 0x2e8   : > { %v1181_v36 = vld [vmem:[%s3442_s7 + $0x28] sm:$0xff]  ;;  %v1183_v40 = vld [vmem:[%s3442_s7 + $0x38] sm:$0xff]  ;;  %v2181_v41 = vld [vmem:[%s3439_s4 + $0x40] sm:$0xff]   ;;  %v2603_v59 = vrot.slane %v2459_v27, %v2591_v53  ;;  %v2607_v60 = vrot.slane %v2464_v28, %v2591_v53  ;;  %v2610_v61 = vrot.slane %v2459_v27, %v932_v54  ;;  %v2613_v62 = vrot.slane %v2464_v28, %v932_v54 }
 0x2e9   : > { %v2182_v42 = vld [vmem:[%s3439_s4] sm:$0xff]   ;;  %2053 = vmatprep.subr.bf16.mxu0 %v2181_v41  ;;  %v2183_v43 = vld [vmem:[%s3439_s4 + $0x48] sm:$0xff]   ;;  %2101 = vmatprep.subr.bf16.mxu1 %v2181_v41  ;;  %v2185_v44 = vld [vmem:[%s3439_s4 + $0x50] sm:$0xff]   ;;  %v2623_v16 = vrot.slane %v2459_v27, %v1072_v56  ;;  %v2626_v17 = vrot.slane %v2464_v28, %v1072_v56  ;;  %3483 = vst [vmem:[#allocation12_spill] sm:$0xff] %v2643_v4  ;;  %vm1216_vm1 = vcmask 1046528   ;;  %vm1277_vm2 = vcmask 1040384  }
 0x2ea   : > { %2054 = vmatpush3.bf16.msra.mxu0 %v2182_v42  ;;  %2109 = vmatpush3.bf16.msra.mxu1 %v2182_v42  ;;  %v2186_v45 = vld [vmem:[%s3439_s4 + $0x10] sm:$0xff]   ;;  %v2187_v46 = vld [vmem:[%s3439_s4 + $0x58] sm:$0xff]   ;;  %v2189_v48 = vld [vmem:[%s3439_s4 + $0x60] sm:$0xff]   ;;  %v2669_v42 = vrot.slane %v2459_v27, %v888_v9 }
 0x2eb   : > { %1198 = vperm.xlu1 %2177, %v1179_v29   ;;  %1190 = vperm.xlu0 %2176, %v1177_v30   ;;  %v2188_v47 = vld [vmem:[%s3439_s4 + $0x18] sm:$0xff]   ;;  %v2190_v49 = vld [vmem:[%s3439_s4 + $0x20] sm:$0xff]   ;;  %v2191_v50 = vld [vmem:[%s3439_s4 + $0x68] sm:$0xff]   ;;  %3478 = vst [vmem:[#allocation7_spill] sm:$0xff] %v2623_v16 }
 0x2ec   : > { %2055 = vmatprep.subr.bf16.mxu0 %v2183_v43  ;;  %2102 = vmatprep.subr.bf16.mxu1 %v2183_v43  ;;  %v2192_v51 = vld [vmem:[%s3439_s4 + $0x28] sm:$0xff]   ;;  %v2193_v52 = vld [vmem:[%s3439_s4 + $0x70] sm:$0xff]   ;;  %v2195_v57 = vld [vmem:[%s3439_s4 + $0x78] sm:$0xff]   ;;  %3479 = vst [vmem:[#allocation8_spill] sm:$0xff] %v2626_v17  ;;  %v2672_v43 = vrot.slane %v2464_v28, %v888_v9 }
 0x2ed   : > { %v2194_v55 = vld [vmem:[%s3439_s4 + $0x30] sm:$0xff]   ;;  %v822_v58 = vld [vmem:[#allocation2] sm:$0x80]  ;;  %v823_v63 = vld [vmem:[#allocation2 + $0x8] sm:$0x80] }
 0x2ee   : > { %v926_v2 = vld [vmem:[#allocation2 + $0x20] sm:$0x80]  ;;  %v927_v12 = vld [vmem:[#allocation2 + $0x28] sm:$0x80]  ;;  %v2615_v13 = vld [vmem:[#allocation2 + $0x30] sm:$0xff]  ;;  %v834_v18 = vmul.f32 %v2603_v59, %v822_v58  ;;  %v835_v19 = vmul.f32 %v2607_v60, %v823_v63 }
 0x2ef   : > { %1206 = vperm.xlu1 %2177, %v1181_v36   ;;  %1202 = vperm.xlu0 %2176, %v1180_v37   ;;  %3476 = vst [vmem:[#allocation5_spill] sm:$0xff] %v2615_v13  ;;  %v2617_v14 = vld [vmem:[#allocation2 + $0x50] sm:$0xff]  ;;  %v2196_v15 = vld [vmem:[%s3439_s4 + $0x38] sm:$0xff]   ;;  %v938_v20 = vmul.f32 %v2610_v61, %v926_v2  ;;  %v939_v21 = vmul.f32 %v2613_v62, %v927_v12  ;;  %v1066_v22 = vld [vmem:[#allocation2 + $0x40] sm:$0x80] }
 0x2f0   : > { %3477 = vst [vmem:[#allocation6_spill] sm:$0xff] %v2617_v14  ;;  %v1067_v23 = vld [vmem:[#allocation2 + $0x48] sm:$0x80]  ;;  %v840_v24 = vmul.f32 %v2603_v59, %v2615_v13  ;;  %v944_v31 = vmul.f32 %v2610_v61, %v2617_v14  ;;  %v2636_v32 = vld [vmem:[#allocation2 + $0x38] sm:$0xff]  ;;  %v2640_v3 = vld [vmem:[#allocation2 + $0x70] sm:$0xff]  ;;  %v1078_v34 = vmul.f32 %v2623_v16, %v1066_v22  ;;  %v940_v58 = vmul.f32 %v2610_v61, %v2615_v13 }
 0x2f1   : > { %3480 = vst [vmem:[#allocation9_spill] sm:$0xff] %v2636_v32  ;;  %v2638_v33 = vld [vmem:[#allocation2 + $0x58] sm:$0xff]  ;;  %3482 = vst [vmem:[#allocation11_spill] sm:$0xff] %v2640_v3  ;;  %v956_v5 = vadd.f32 %v938_v20, %v834_v18  ;;  %v957_v6 = vadd.f32 %v939_v21, %v835_v19  ;;  %v1079_v7 = vmul.f32 %v2626_v17, %v1067_v23  ;;  %v2688_v54 = vld [vmem:[#allocation2 + $0x40] sm:$0xff] }
 0x2f2   : > { %3481 = vst [vmem:[#allocation10_spill] sm:$0xff] %v2638_v33  ;;  %v2648_v35 = vld [vmem:[#allocation2 + $0x78] sm:$0xff]  ;;  %3487 = vst [vmem:[#allocation16_spill] sm:$0xff] %v2688_v54  ;;  %v941_v63 = vmul.f32 %v2613_v62, %v2636_v32  ;;  %v894_v12 = vmul.f32 %v2669_v42, %v2615_v13  ;;  %v2708_v18 = vrot.slane %v2359_v0, %v2454_v26 }
 0x2f3   : > { %2178 = vset.pattern.permute.xlu1 %v2275_v39  ;;  %1210 = vperm.xlu0 %2176, %v1182_v38   ;;  %v1085_v41 = vmul.f32 %v2626_v17, %v2648_v35  ;;  %v896_v19 = vmul.f32 %v2669_v42, %v2688_v54  ;;  %v898_v21 = vmul.f32 %v2669_v42, %v2617_v14 }
 0x2f4   : > { %1345 = vperm.xlu1 %2178, %v1176_v11   ;;  %v945_v11 = vmul.f32 %v2613_v62, %v2638_v33  ;;  %3489 = vst [vmem:[#allocation18_spill] sm:$0xff] %v2708_v18  ;;  %v899_v22 = vmul.f32 %v2672_v43, %v2638_v33 }
 0x2f7   : > { %2179 = vset.pattern.permute.xlu0 %v2275_v39  ;;  %v783_v39 = vld [vmem:[#allocation2 + $0x18] sm:$0xff] }
 0x2f8   : > { %1351 = vperm.xlu1 %2178, %v1178_v10   ;;  %1348 = vperm.xlu0 %2179, %v1177_v30   ;;  %v841_v10 = vmul.f32 %v2607_v60, %v2636_v32  ;;  %v1084_v30 = vmul.f32 %v2623_v16, %v2640_v3 }
 0x2fc   : > { %1354 = vperm.xlu1 %2178, %v1179_v29   ;;  %1357 = vperm.xlu0 %2179, %v1180_v37   ;;  %v962_v29 = vadd.f32 %v944_v31, %v840_v24  ;;  %v2658_v37 = vrot.slane %v2459_v27, %v2643_v4  ;;  %v942_v31 = vmul.f32 %v2610_v61, %v2688_v54 }
 0x300   : > { %1360 = vperm.xlu1 %2178, %v1181_v36   ;;  %1363 = vperm.xlu0 %2179, %v1182_v38   ;;  %v782_v36 = vld [vmem:[#allocation2 + $0x10] sm:$0xff]  ;;  %v2662_v38 = vrot.slane %v2464_v28, %v2643_v4 }
 0x302   : > { %v811_v2 = vmul.f32 %v2662_v38, %v2636_v32 }
 0x304   : > { %2180 = vset.pattern.permute.xlu1 %v2270_v8  ;;  %1366 = vperm.xlu0 %2179, %v1183_v40   ;;  %v2184_v8 = vld [vmem:[%s3439_s4 + $0x8] sm:$0xff]  }
 0x305   : > { %1214 = vperm.xlu1 %2180, %v1183_v40   ;;  %2056 = vmatpush3.bf16.msra.mxu0 %v2184_v8  ;;  %v2664_v40 = vadd.f32 %v1078_v34, %v956_v5 }
 0x306   : > { %2110 = vmatpush3.bf16.msra.mxu1 %v2184_v8  ;;  %2057 = vmatprep.subr.bf16.mxu0 %v2185_v44  ;;  %v2674_v8 = vadd.f32 %v1079_v7, %v957_v6 }
 0x307   : > { %2103 = vmatprep.subr.bf16.mxu1 %v2185_v44  ;;  %3484 = vst [vmem:[#allocation13_spill] sm:$0xff] %v2664_v40  ;;  %v963_v44 = vadd.f32 %v945_v11, %v841_v10  ;;  %v2733_v10 = vld [vmem:[#allocation2 + $0x60] sm:$0xff] }
 0x308   : > { %3485 = vst [vmem:[#allocation14_spill] sm:$0xff] %v2674_v8  ;;  %v946_v9 = vmul.f32 %v2610_v61, %v2733_v10  ;;  %v2794_v40 = vld [vmem:[#allocation2 + $0x80] sm:$0xff] }
 0x309   : > { %2058 = vmatpush3.bf16.msra.mxu0 %v2186_v45  ;;  %v2726_v5 = vadd.f32 %v1085_v41, %v963_v44 }
 0x30a   : > { %2111 = vmatpush3.bf16.msra.mxu1 %v2186_v45  ;;  %2059 = vmatprep.subr.bf16.mxu0 %v2187_v46  ;;  %v2676_v45 = vadd.f32 %v1084_v30, %v962_v29  ;;  %v2737_v30 = vrot.slane %v2364_v1, %v2454_v26  ;;  %v1038_v26 = vmul.f32 %v2708_v18, %v2640_v3 }
 0x30b   : > { %2104 = vmatprep.subr.bf16.mxu1 %v2187_v46  ;;  %v2678_v46 = vld [vmem:[#allocation2 + $0x20] sm:$0xff]  ;;  %3490 = vst [vmem:[#allocation19_spill] sm:$0xff] %v2726_v5 }
 0x30c   : > { %3486 = vst [vmem:[#allocation15_spill] sm:$0xff] %v2676_v45  ;;  %v838_v23 = vmul.f32 %v2603_v59, %v2678_v46  ;;  %3491 = vst [vmem:[#allocation20_spill] sm:$0xff] %v2737_v30 }
 0x30d   : > { %2060 = vmatpush3.bf16.msra.mxu0 %v2188_v47 }
 0x30e   : > { %2112 = vmatpush3.bf16.msra.mxu1 %v2188_v47  ;;  %2061 = vmatprep.subr.bf16.mxu0 %v2189_v48  ;;  %v836_v47 = vmul.f32 %v2603_v59, %v782_v36 }
 0x30f   : > { %2105 = vmatprep.subr.bf16.mxu1 %v2189_v48  ;;  %v2681_v48 = vld [vmem:[#allocation2 + $0x28] sm:$0xff] }
 0x310   : > { %v809_v56 = vmul.f32 %v2662_v38, %v2681_v48  ;;  %v839_v24 = vmul.f32 %v2607_v60, %v2681_v48  ;;  %v2728_v6 = vadd.f32 %v940_v58, %v836_v47  ;;  %v915_v47 = vadd.f32 %v899_v22, %v811_v2 }
 0x311   : > { %2062 = vmatpush3.bf16.msra.mxu0 %v2190_v49  ;;  %v960_v58 = vadd.f32 %v942_v31, %v838_v23  ;;  %v815_v22 = vmul.f32 %v2662_v38, %v2638_v33  ;;  %v900_v23 = vmul.f32 %v2669_v42, %v2733_v10  ;;  %v902_v31 = vmul.f32 %v2669_v42, %v2640_v3 }
 0x312   : > { %2063 = vmatprep.subr.bf16.mxu0 %v2191_v50  ;;  %2113 = vmatpush3.bf16.msra.mxu1 %v2190_v49  ;;  %v806_v49 = vmul.f32 %v2658_v37, %v782_v36  ;;  %v1034_v36 = vmul.f32 %v2708_v18, %v2617_v14 }
 0x313   : > { %2106 = vmatprep.subr.bf16.mxu1 %v2191_v50  ;;  %v807_v50 = vmul.f32 %v2662_v38, %v783_v39 }
 0x314   : > { %v910_v11 = vadd.f32 %v894_v12, %v806_v49  ;;  %v2744_v49 = vld [vmem:[#allocation2 + $0x68] sm:$0xff]  ;;  %v1039_v12 = vmul.f32 %v2737_v30, %v2648_v35 }
 0x315   : > { %2064 = vmatpush3.bf16.msra.mxu0 %v2192_v51  ;;  %v1037_v2 = vmul.f32 %v2737_v30, %v2744_v49  ;;  %v1083_v8 = vmul.f32 %v2626_v17, %v2744_v49 }
 0x316   : > { %2065 = vmatprep.subr.bf16.mxu0 %v2193_v52  ;;  %2114 = vmatpush3.bf16.msra.mxu1 %v2192_v51  ;;  %v808_v51 = vmul.f32 %v2658_v37, %v2678_v46 }
 0x317   : > { %2107 = vmatprep.subr.bf16.mxu1 %v2193_v52  ;;  %v837_v52 = vmul.f32 %v2607_v60, %v783_v39 }
 0x318   : > { %v912_v39 = vadd.f32 %v896_v19, %v808_v51  ;;  %v1081_v51 = vmul.f32 %v2626_v17, %v2638_v33  ;;  %v812_v19 = vmul.f32 %v2658_v37, %v2688_v54 }
 0x319   : > { %2066 = vmatpush3.bf16.msra.mxu0 %v2194_v55  ;;  %v2730_v7 = vadd.f32 %v941_v63, %v837_v52  ;;  %v1036_v63 = vmul.f32 %v2708_v18, %v2733_v10 }
 0x31a   : > { %2067 = vmatprep.subr.bf16.mxu0 %v2195_v57  ;;  %2115 = vmatpush3.bf16.msra.mxu1 %v2194_v55  ;;  %v2690_v55 = vld [vmem:[#allocation2 + $0x48] sm:$0xff] }
 0x31b   : > { %2108 = vmatprep.subr.bf16.mxu1 %v2195_v57  ;;  %3488 = vst [vmem:[#allocation17_spill] sm:$0xff] %v2690_v55  ;;  %v810_v57 = vmul.f32 %v2658_v37, %v2615_v13  ;;  %v897_v20 = vmul.f32 %v2672_v43, %v2690_v55  ;;  %v943_v34 = vmul.f32 %v2613_v62, %v2690_v55 }
 0x31c   : > { %v2788_v5 = vadd.f32 %v1036_v63, %v912_v39  ;;  %v844_v13 = vmul.f32 %v2603_v59, %v2617_v14  ;;  %v949_v39 = vmul.f32 %v2613_v62, %v2648_v35 }
 0x31d   : > { %2068 = vmatpush3.bf16.msra.mxu0 %v2196_v15  ;;  %v913_v41 = vadd.f32 %v897_v20, %v809_v56  ;;  %v914_v44 = vadd.f32 %v898_v21, %v810_v57  ;;  %v961_v52 = vadd.f32 %v943_v34, %v839_v24  ;;  %v1082_v56 = vmul.f32 %v2623_v16, %v2733_v10 }
 0x31e   : > { %2116 = vmatpush3.bf16.msra.mxu1 %v2196_v15  ;;  %v895_v15 = vmul.f32 %v2672_v43, %v2636_v32  ;;  %v1035_v57 = vmul.f32 %v2737_v30, %v2638_v33  ;;  %v813_v20 = vmul.f32 %v2662_v38, %v2690_v55  ;;  %v814_v21 = vmul.f32 %v2658_v37, %v2617_v14  ;;  %v2796_v32 = vld [vmem:[#allocation2 + $0x88] sm:$0xff] }
 0x31f   : > { %v901_v24 = vmul.f32 %v2672_v43, %v2744_v49  ;;  %v903_v34 = vmul.f32 %v2672_v43, %v2648_v35  ;;  %3494 = vst [vmem:[#allocation23_spill] sm:$0xff] %v2788_v5  ;;  %v2790_v45 = vadd.f32 %v1038_v26, %v914_v44  ;;  %v916_v44 = vadd.f32 %v900_v23, %v812_v19  ;;  %v2808_v5 = vld [vmem:[#allocation2 + $0x98] sm:$0xff] }
 0x320   : > { %v911_v29 = vadd.f32 %v895_v15, %v807_v50  ;;  %v1080_v50 = vmul.f32 %v2623_v16, %v2617_v14  ;;  %v2760_v15 = vadd.f32 %v1034_v36, %v910_v11  ;;  %v842_v11 = vmul.f32 %v2603_v59, %v2688_v54 }
 0x321   : > { %v843_v36 = vmul.f32 %v2607_v60, %v2690_v55  ;;  %3495 = vst [vmem:[#allocation24_spill] sm:$0xff] %v2790_v45  ;;  %v845_v55 = vmul.f32 %v2607_v60, %v2638_v33  ;;  %v917_v63 = vadd.f32 %v901_v24, %v813_v20  ;;  %v918_v26 = vadd.f32 %v902_v31, %v814_v21  ;;  %v2806_v45 = vld [vmem:[#allocation2 + $0x90] sm:$0xff] }
 0x322   : > { %3492 = vst [vmem:[#allocation21_spill] sm:$0xff] %v2760_v15  ;;  %v947_v15 = vmul.f32 %v2613_v62, %v2744_v49  ;;  %v2786_v4 = vadd.f32 %v1035_v57, %v911_v29  ;;  %v948_v29 = vmul.f32 %v2610_v61, %v2640_v3  ;;  %v919_v57 = vadd.f32 %v903_v34, %v815_v22 }
 0x323   : > { %v1040_v14 = vmul.f32 %v2708_v18, %v2794_v40  ;;  %v1041_v33 = vmul.f32 %v2737_v30, %v2796_v32  ;;  %v1042_v3 = vmul.f32 %v2708_v18, %v2806_v45  ;;  %v1043_v19 = vmul.f32 %v2737_v30, %v2808_v5 }
 0x324   : > { %3493 = vst [vmem:[#allocation22_spill] sm:$0xff] %v2786_v4  ;;  %v964_v4 = vadd.f32 %v946_v9, %v842_v11  ;;  %v965_v54 = vadd.f32 %v947_v15, %v843_v36  ;;  %v1086_v20 = vmul.f32 %v2623_v16, %v2794_v40  ;;  %v1087_v21 = vmul.f32 %v2626_v17, %v2796_v32 }
 0x325   : > { %v2822_v9 = vadd.f32 %v1037_v2, %v913_v41  ;;  %v2824_v15 = vadd.f32 %v1039_v12, %v915_v47  ;;  %v2827_v22 = vadd.f32 %v1080_v50, %v2728_v6  ;;  %v2830_v23 = vadd.f32 %v1081_v51, %v2730_v7  ;;  %v852_v50 = vld [vmem:[#allocation2 + $0x10] sm:$0xfe] }
 0x326   : > { %v966_v24 = vadd.f32 %v948_v29, %v844_v13  ;;  %v967_v31 = vadd.f32 %v949_v39, %v845_v55  ;;  %v1088_v34 = vmul.f32 %v2623_v16, %v2806_v45  ;;  %v1089_v11 = vmul.f32 %v2626_v17, %v2808_v5  ;;  %v853_v39 = vld [vmem:[#allocation2 + $0x18] sm:$0xfe] }
 0x327   : > { %3496 = vst [vmem:[#allocation25_spill] sm:$0xff] %v2822_v9  ;;  %3497 = vst [vmem:[#allocation26_spill] sm:$0xff] %v2824_v15  ;;  %v2836_v36 = vadd.f32 %v1082_v56, %v960_v58  ;;  %v2838_v41 = vadd.f32 %v1083_v8, %v961_v52  ;;  %v2840_v47 = vadd.f32 %v1040_v14, %v916_v44  ;;  %v3508_v51 = vsub.s32 3, %v2451_v25  ;;  %v974_v44 = vld [vmem:[#allocation2 + $0x30] sm:$0xfe] }
 0x328   : > { %3498 = vst [vmem:[#allocation27_spill] sm:$0xff] %v2827_v22  ;;  %3499 = vst [vmem:[#allocation28_spill] sm:$0xff] %v2830_v23  ;;  %v2842_v2 = vadd.f32 %v1041_v33, %v917_v63  ;;  %v2844_v6 = vadd.f32 %v1042_v3, %v918_v26  ;;  %v2846_v7 = vadd.f32 %v1043_v19, %v919_v57  ;;  %v3510_v33 = vsub.s32 6, %v2451_v25  ;;  %v975_v63 = vld [vmem:[#allocation2 + $0x38] sm:$0xfe]  ;;  %v2886_v26 = vld [vmem:[#allocation2 + $0xa0] sm:$0xff] }
 0x329   : > { %3500 = vst [vmem:[#allocation29_spill] sm:$0xff] %v2836_v36  ;;  %3501 = vst [vmem:[#allocation30_spill] sm:$0xff] %v2838_v41  ;;  %v2848_v13 = vadd.f32 %v1086_v20, %v964_v4  ;;  %v2850_v55 = vadd.f32 %v1087_v21, %v965_v54  ;;  %v2855_v58 = vrot.slane %v2459_v27, %v3508_v51  ;;  %v3509_v8 = vmov %v3508_v51  ;;  %v2888_v57 = vld [vmem:[#allocation2 + $0xa8] sm:$0xff]  ;;  %v3518_v36 = vld [vmem:[#allocation6_spill] sm:$0xff] }
 0x32a   : > { %3502 = vst [vmem:[#allocation31_spill] sm:$0xff] %v2840_v47  ;;  %3503 = vst [vmem:[#allocation32_spill] sm:$0xff] %v2842_v2  ;;  %v2860_v14 = vrot.slane %v2464_v28, %v3509_v8  ;;  %v2865_v3 = vrot.slane %v2459_v27, %v3510_v33  ;;  %v3511_v4 = vmov %v3510_v33  ;;  %v2872_v52 = vadd.f32 %v1088_v34, %v966_v24  ;;  %v1114_v2 = vld [vmem:[#allocation2 + $0x50] sm:$0xfe] }
 0x32b   : > { %3504 = vst [vmem:[#allocation33_spill] sm:$0xff] %v2844_v6  ;;  %3505 = vst [vmem:[#allocation34_spill] sm:$0xff] %v2846_v7  ;;  %v2870_v54 = vrot.slane %v2464_v28, %v3511_v4  ;;  %v2874_v56 = vadd.f32 %v1089_v11, %v967_v31  ;;  %v816_v12 = vmul.f32 %v2658_v37, %v2733_v10 }
 0x32c   : > { %3506 = vst [vmem:[#allocation35_spill] sm:$0xff] %v2848_v13  ;;  %3507 = vst [vmem:[#allocation36_spill] sm:$0xff] %v2850_v55  ;;  %v904_v29 = vmul.f32 %v2669_v42, %v2794_v40  ;;  %v817_v27 = vmul.f32 %v2662_v38, %v2744_v49  ;;  %v846_v25 = vmul.f32 %v2603_v59, %v2733_v10  ;;  %v3517_v55 = vld [vmem:[#allocation9_spill] sm:$0xff] }
 0x32d   : > { %3512 = vst [vmem:[#allocation37_spill] sm:$0xff] %v2872_v52  ;;  %3513 = vst [vmem:[#allocation38_spill] sm:$0xff] %v2874_v56  ;;  %v847_v28 = vmul.f32 %v2607_v60, %v2744_v49  ;;  %v905_v19 = vmul.f32 %v2672_v43, %v2796_v32  ;;  %v950_v20 = vmul.f32 %v2610_v61, %v2794_v40  ;;  %v3516_v52 = vld [vmem:[#allocation5_spill] sm:$0xff] }
 0x32e   : > { %v951_v21 = vmul.f32 %v2613_v62, %v2796_v32  ;;  %v1044_v24 = vmul.f32 %v2708_v18, %v2886_v26  ;;  %v1045_v31 = vmul.f32 %v2737_v30, %v2888_v57  ;;  %v864_v34 = vmul.f32 %v2855_v58, %v852_v50  ;;  %v1115_v50 = vld [vmem:[#allocation2 + $0x58] sm:$0xfe]  ;;  %v1130_v18 = vld [vmem:[#allocation2 + $0xd0] sm:$0x1] }
 0x32f   : > { %v865_v11 = vmul.f32 %v2860_v14, %v853_v39  ;;  %v986_v51 = vmul.f32 %v2865_v3, %v974_v44  ;;  %v987_v8 = vmul.f32 %v2870_v54, %v975_v63  ;;  %v920_v33 = vadd.f32 %v904_v29, %v816_v12  ;;  %v3514_v12 = vld [vmem:[#allocation16_spill] sm:$0xff]  ;;  %v3515_v63 = vld [vmem:[#allocation17_spill] sm:$0xff] }
 0x330   : > { %v1090_v4 = vmul.f32 %v2623_v16, %v2886_v26  ;;  %v2908_v7 = vrot.slane %v2359_v0, %v2591_v53  ;;  %v2912_v6 = vrot.slane %v2364_v1, %v2591_v53  ;;  %v866_v39 = vmul.f32 %v2855_v58, %v2678_v46  ;;  %v3018_v16 = vld [vmem:[#allocation2 + $0xc8] sm:$0xff] }
 0x331   : > { %v867_v44 = vmul.f32 %v2860_v14, %v2681_v48  ;;  %v988_v29 = vmul.f32 %v2865_v3, %v3514_v12  ;;  %v989_v47 = vmul.f32 %v2870_v54, %v3515_v63  ;;  %v921_v15 = vadd.f32 %v905_v19, %v817_v27 }
 0x332   : > { %v968_v9 = vadd.f32 %v950_v20, %v846_v25  ;;  %v969_v0 = vadd.f32 %v951_v21, %v847_v28  ;;  %v1091_v53 = vmul.f32 %v2626_v17, %v2888_v57  ;;  %v1004_v1 = vadd.f32 %v986_v51, %v864_v34  ;;  %v3519_v25 = vld [vmem:[#allocation10_spill] sm:$0xff] }
 0x333   : > { %v1005_v56 = vadd.f32 %v987_v8, %v865_v11  ;;  %v868_v46 = vmul.f32 %v2855_v58, %v3516_v52  ;;  %v869_v48 = vmul.f32 %v2860_v14, %v3517_v55  ;;  %v1140_v13 = vmul.f32 %v2908_v7, %v1114_v2 }
 0x334   : > { %v1141_v41 = vmul.f32 %v2912_v6, %v1115_v50  ;;  %v990_v27 = vmul.f32 %v2865_v3, %v3518_v36  ;;  %v991_v28 = vmul.f32 %v2870_v54, %v3519_v25  ;;  %v1006_v19 = vadd.f32 %v988_v29, %v866_v39 }
 0x335   : > { %v1007_v20 = vadd.f32 %v989_v47, %v867_v44  ;;  %v1142_v21 = vmul.f32 %v2908_v7, %v2733_v10  ;;  %v1143_v52 = vmul.f32 %v2912_v6, %v2744_v49  ;;  %v2938_v34 = vadd.f32 %v1044_v24, %v920_v33 }
 0x336   : > { %v2940_v55 = vadd.f32 %v1045_v31, %v921_v15  ;;  %v2942_v2 = vadd.f32 %v1090_v4, %v968_v9  ;;  %v2944_v11 = vadd.f32 %v1091_v53, %v969_v0  ;;  %v870_v51 = vmul.f32 %v2855_v58, %v3514_v12  ;;  %v3526_v0 = vld [vmem:[#allocation11_spill] sm:$0xff] }
 0x337   : > { %3520 = vst [vmem:[#allocation16_spill] sm:$0xff] %v2938_v34  ;;  %v871_v47 = vmul.f32 %v2860_v14, %v3515_v63  ;;  %v992_v8 = vmul.f32 %v2865_v3, %v2733_v10  ;;  %v993_v50 = vmul.f32 %v2870_v54, %v2744_v49  ;;  %v2954_v24 = vadd.f32 %v1140_v13, %v1004_v1  ;;  %v855_v34 = vld [vmem:[#allocation2 + $0x98] sm:$0x1] }
 0x338   : > { %3521 = vst [vmem:[#allocation17_spill] sm:$0xff] %v2940_v55  ;;  %3522 = vst [vmem:[#allocation5_spill] sm:$0xff] %v2942_v2  ;;  %v2956_v15 = vadd.f32 %v1141_v41, %v1005_v56  ;;  %v1008_v9 = vadd.f32 %v990_v27, %v868_v46  ;;  %v1009_v31 = vadd.f32 %v991_v28, %v869_v48 }
 0x339   : > { %3523 = vst [vmem:[#allocation9_spill] sm:$0xff] %v2944_v11  ;;  %3524 = vst [vmem:[#allocation6_spill] sm:$0xff] %v2954_v24  ;;  %v1144_v33 = vmul.f32 %v2908_v7, %v3526_v0  ;;  %v1145_v4 = vmul.f32 %v2912_v6, %v2648_v35  ;;  %v2962_v39 = vadd.f32 %v1142_v21, %v1006_v19  ;;  %v1128_v11 = vld [vmem:[#allocation2 + $0xc0] sm:$0xff] }
 0x33a   : > { %3525 = vst [vmem:[#allocation10_spill] sm:$0xff] %v2956_v15  ;;  %v2964_v44 = vadd.f32 %v1143_v52, %v1007_v20  ;;  %v872_v12 = vmul.f32 %v2855_v58, %v3518_v36  ;;  %v873_v1 = vmul.f32 %v2860_v14, %v3519_v25  ;;  %v994_v41 = vmul.f32 %v2865_v3, %v3526_v0 }
 0x33b   : > { %3527 = vst [vmem:[#allocation11_spill] sm:$0xff] %v2962_v39  ;;  %v995_v13 = vmul.f32 %v2870_v54, %v2648_v35  ;;  %v1010_v56 = vadd.f32 %v992_v8, %v870_v51  ;;  %v1011_v29 = vadd.f32 %v993_v50, %v871_v47  ;;  %v1146_v63 = vmul.f32 %v2908_v7, %v2794_v40  ;;  %v2998_v51 = vld [vmem:[#allocation2 + $0xb0] sm:$0xff]  ;;  %v3000_v47 = vld [vmem:[#allocation2 + $0xb8] sm:$0xff] }
 0x33c   : > { %3528 = vst [vmem:[#allocation39_spill] sm:$0xff] %v2964_v44  ;;  %v1147_v53 = vmul.f32 %v2912_v6, %v2796_v32  ;;  %v874_v36 = vmul.f32 %v2855_v58, %v2733_v10  ;;  %v875_v46 = vmul.f32 %v2860_v14, %v2744_v49  ;;  %v996_v48 = vmul.f32 %v2865_v3, %v2794_v40  ;;  %v854_v8 = vld [vmem:[#allocation2 + $0x90] sm:$0x1] }
 0x33d   : > { %v997_v27 = vmul.f32 %v2870_v54, %v2796_v32  ;;  %v876_v25 = vmul.f32 %v2855_v58, %v3526_v0  ;;  %v877_v28 = vmul.f32 %v2860_v14, %v2648_v35  ;;  %v998_v19 = vmul.f32 %v2865_v3, %v2806_v45  ;;  %3529 = vst [vmem:[#allocation40_spill] sm:$0xff] %v2998_v51 }
 0x33e   : > { %v999_v10 = vmul.f32 %v2870_v54, %v2808_v5  ;;  %v1012_v20 = vadd.f32 %v994_v41, %v872_v12  ;;  %v1013_v49 = vadd.f32 %v995_v13, %v873_v1  ;;  %v1148_v21 = vmul.f32 %v2908_v7, %v2806_v45  ;;  %3530 = vst [vmem:[#allocation41_spill] sm:$0xff] %v3000_v47  ;;  %v976_v1 = vld [vmem:[#allocation2 + $0xb0] sm:$0x1]  ;;  %v977_v41 = vld [vmem:[#allocation2 + $0xb8] sm:$0x1] }
 0x33f   : > { %v1149_v52 = vmul.f32 %v2912_v6, %v2808_v5  ;;  %v1150_v50 = vmul.f32 %v2908_v7, %v2886_v26  ;;  %v1151_v55 = vmul.f32 %v2912_v6, %v2888_v57  ;;  %v878_v12 = vmul.f32 %v2855_v58, %v2794_v40 }
 0x340   : > { %v1000_v13 = vmul.f32 %v2865_v3, %v2886_v26  ;;  %v1014_v44 = vadd.f32 %v996_v48, %v874_v36  ;;  %v1015_v15 = vadd.f32 %v997_v27, %v875_v46  ;;  %v879_v39 = vmul.f32 %v2860_v14, %v2796_v32 }
 0x341   : > { %v1001_v24 = vmul.f32 %v2870_v54, %v2888_v57  ;;  %v1016_v2 = vadd.f32 %v998_v19, %v876_v25  ;;  %v1017_v23 = vadd.f32 %v999_v10, %v877_v28  ;;  %v1152_v22 = vmul.f32 %v2908_v7, %v2998_v51 }
 0x342   : > { %v1153_v17 = vmul.f32 %v2912_v6, %v3000_v47  ;;  %v880_v36 = vmul.f32 %v2855_v58, %v854_v8  ;;  %v881_v46 = vmul.f32 %v2860_v14, %v855_v34  ;;  %v1002_v48 = vmul.f32 %v2865_v3, %v976_v1  ;;  %v1131_v58 = vld [vmem:[#allocation2 + $0xd8] sm:$0x1] }
 0x343   : > { %v1003_v27 = vmul.f32 %v2870_v54, %v977_v41  ;;  %v3024_v30 = vadd.f32 %v1144_v33, %v1008_v9  ;;  %v3026_v25 = vadd.f32 %v1145_v4, %v1009_v31  ;;  %v1018_v28 = vadd.f32 %v1000_v13, %v878_v12  ;;  %v3531_v8 = vld [vmem:[#allocation18_spill] sm:$0xff]  ;;  %v3533_v12 = vld [vmem:[#allocation20_spill] sm:$0xff] }
 0x344   : > { %v1154_v19 = vmul.f32 %v2908_v7, %v1128_v11  ;;  %v3029_v10 = vadd.f32 %v1146_v63, %v1010_v56  ;;  %v3031_v47 = vadd.f32 %v1147_v53, %v1011_v29  ;;  %v1019_v51 = vadd.f32 %v1001_v24, %v879_v39 }
 0x345   : > { %v1155_v14 = vmul.f32 %v2912_v6, %v3018_v16  ;;  %v3035_v3 = vadd.f32 %v1148_v21, %v1012_v20  ;;  %v3037_v54 = vadd.f32 %v1149_v52, %v1013_v49  ;;  %v3039_v34 = vadd.f32 %v1150_v50, %v1014_v44  ;;  %v824_v44 = vld [vmem:[#allocation2 + $0x80] sm:$0x7f]  ;;  %v3532_v50 = vld [vmem:[#allocation40_spill] sm:$0xff]  ;;  %v3534_v1 = vld [vmem:[#allocation41_spill] sm:$0xff] }
 0x346   : > { %v3041_v9 = vadd.f32 %v1151_v55, %v1015_v15  ;;  %v3043_v31 = vadd.f32 %v1152_v22, %v1016_v2  ;;  %v3045_v33 = vadd.f32 %v1153_v17, %v1017_v23  ;;  %v1020_v4 = vadd.f32 %v1002_v48, %v880_v36  ;;  %v825_v17 = vld [vmem:[#allocation2 + $0x88] sm:$0x7f]  ;;  %v1068_v36 = vld [vmem:[#allocation2 + $0xc0] sm:$0x7f] }
 0x347   : > { %v1021_v56 = vadd.f32 %v1003_v27, %v881_v46  ;;  %v1156_v24 = vmul.f32 %v2908_v7, %v1130_v18  ;;  %v1157_v39 = vmul.f32 %v2912_v6, %v1131_v58  ;;  %v3049_v29 = vadd.f32 %v1154_v19, %v1018_v28  ;;  %v928_v7 = vld [vmem:[#allocation2 + $0xa0] sm:$0x7f]  ;;  %v929_v6 = vld [vmem:[#allocation2 + $0xa8] sm:$0x7f] }
 0x348   : > { %v818_v63 = vmul.f32 %v2658_v37, %v3526_v0  ;;  %v3053_v53 = vadd.f32 %v1155_v14, %v1019_v51  ;;  %v819_v22 = vmul.f32 %v2662_v38, %v2648_v35  ;;  %v906_v23 = vmul.f32 %v2669_v42, %v2806_v45  ;;  %v3535_v58 = vld [vmem:[#allocation7_spill] sm:$0xff] }
 0x349   : > { %v907_v18 = vmul.f32 %v2672_v43, %v2808_v5  ;;  %v820_v55 = vmul.f32 %v2658_v37, %v2794_v40  ;;  %v821_v2 = vmul.f32 %v2662_v38, %v2796_v32  ;;  %v848_v15 = vmul.f32 %v2603_v59, %v3526_v0 }
 0x34a   : > { %v908_v20 = vmul.f32 %v2669_v42, %v2886_v26  ;;  %v849_v49 = vmul.f32 %v2607_v60, %v2648_v35  ;;  %v909_v21 = vmul.f32 %v2672_v43, %v2888_v57  ;;  %v952_v52 = vmul.f32 %v2610_v61, %v2806_v45 }
 0x34b   : > { %v953_v37 = vmul.f32 %v2613_v62, %v2808_v5  ;;  %v850_v38 = vmul.f32 %v2603_v59, %v824_v44  ;;  %v851_v0 = vmul.f32 %v2607_v60, %v825_v17  ;;  %v954_v42 = vmul.f32 %v2610_v61, %v928_v7 }
 0x34c   : > { %v955_v26 = vmul.f32 %v2613_v62, %v929_v6  ;;  %v3081_v35 = vadd.f32 %v1156_v24, %v1020_v4  ;;  %v3083_v51 = vadd.f32 %v1157_v39, %v1021_v56  ;;  %v922_v43 = vadd.f32 %v906_v23, %v818_v63  ;;  %v3536_v39 = vld [vmem:[#allocation8_spill] sm:$0xff] }
 0x34d   : > { %v923_v57 = vadd.f32 %v907_v18, %v819_v22  ;;  %v924_v45 = vadd.f32 %v908_v20, %v820_v55  ;;  %v1046_v5 = vmul.f32 %v3532_v50, %v3531_v8  ;;  %v1047_v41 = vmul.f32 %v3534_v1, %v3533_v12  ;;  %v3537_v18 = vld [vmem:[#allocation13_spill] sm:$0xff]  ;;  %v3539_v20 = vld [vmem:[#allocation27_spill] sm:$0xff] }
 0x34e   : > { %v1048_v59 = vmul.f32 %v1128_v11, %v3531_v8  ;;  %v925_v61 = vadd.f32 %v909_v21, %v821_v2  ;;  %v970_v13 = vadd.f32 %v952_v52, %v848_v15  ;;  %v971_v62 = vadd.f32 %v953_v37, %v849_v49  ;;  %v1069_v11 = vld [vmem:[#allocation2 + $0xc8] sm:$0x7f]  ;;  %v3538_v2 = vld [vmem:[#allocation14_spill] sm:$0xff] }
 0x34f   : > { %v972_v27 = vadd.f32 %v954_v42, %v850_v38  ;;  %v973_v28 = vadd.f32 %v955_v26, %v851_v0  ;;  %v1049_v19 = vmul.f32 %v3018_v16, %v3533_v12  ;;  %v1092_v14 = vmul.f32 %v3532_v50, %v3535_v58  ;;  %v3540_v21 = vld [vmem:[#allocation28_spill] sm:$0xff]  ;;  %v3541_v38 = vld [vmem:[#allocation29_spill] sm:$0xff]  ;;  %v3542_v42 = vld [vmem:[#allocation30_spill] sm:$0xff] }
 0x350   : > { %v1093_v63 = vmul.f32 %v3534_v1, %v3536_v39  ;;  %v3096_v44 = vadd.f32 %v1046_v5, %v922_v43  ;;  %v3098_v22 = vadd.f32 %v1047_v41, %v923_v57  ;;  %v3100_v17 = vadd.f32 %v1048_v59, %v924_v45  ;;  %v3543_v45 = vld [vmem:[#allocation15_spill] sm:$0xff] }
 0x351   : > { %v1094_v23 = vmul.f32 %v3535_v58, %v1068_v36  ;;  %v3544_v50 = vld [vmem:[#allocation19_spill] sm:$0xff]  ;;  %v3115_v1 = vadd.f32 %v1049_v19, %v925_v61 }
 0x352   : > { %v3545_v58 = vld [vmem:[#allocation35_spill] sm:$0xff]  ;;  %v3125_v61 = vadd.f32 %v1093_v63, %v971_v62 }
 0x353   : > { %v3127_v19 = vadd.f32 %v1094_v23, %v972_v27 }
 0x366   : > { %v1195_v40 = vpop.permute.xlu1 %1194  ;;  %v1187_v32 = vpop.permute.xlu0 %1186 }
 0x367   : > { %v1217_v60 = vrot.slane %v1187_v32, 1  ;;  %v1220_v4 = vrot.slane %v1195_v40, 1  ;;  %v1095_v32 = vmul.f32 %v3536_v39, %v1069_v11 }
 0x369   : > { %v1241_v16 = vmul.f32 %v1217_v60, %v3537_v18  ;;  %v1242_v15 = vmul.f32 %v1217_v60, %v3538_v2  ;;  %v3130_v2 = vadd.f32 %v1095_v32, %v973_v28  ;;  %v3549_v28 = vld [vmem:[#allocation12_spill] sm:$0xff] }
 0x36a   : > { %v1199_v46 = vpop.permute.xlu1 %1198  ;;  %v1191_v48 = vpop.permute.xlu0 %1190  ;;  %v3550_v32 = vld [vmem:[#allocation4_spill] sm:$0xff] }
 0x36b   : > { %v1222_v56 = vrot.slane %v1199_v46, 1  ;;  %v1218_v24 = vrot.slane %v1191_v48, 1  ;;  %v1278_v41 = vrot.slane %v1241_v16, 7  ;;  %v1281_v18 = vrot.slane %v1242_v15, 7  ;;  %v3548_v15 = vld [vmem:[#allocation38_spill] sm:$0xff] }
 0x36d   : > { %v1223_v7 = vsel %vm1216_vm1, %v1220_v4, %v1222_v56  ;;  %v1219_v6 = vsel %vm1216_vm1, %v1217_v60, %v1218_v24  ;;  %v1221_v55 = vsel %vm1216_vm1, %v1218_v24, %v1220_v4  ;;  %v3546_v24 = vld [vmem:[#allocation36_spill] sm:$0xff] }
 0x36e   : > { %v1243_v49 = vmul.f32 %v1219_v6, %v3539_v20  ;;  %v1244_v52 = vmul.f32 %v1219_v6, %v3540_v21  ;;  %v1207_v37 = vpop.permute.xlu1 %1206  ;;  %v1203_v40 = vpop.permute.xlu0 %1202  ;;  %v1245_v0 = vmul.f32 %v1221_v55, %v3541_v38  ;;  %v1246_v26 = vmul.f32 %v1221_v55, %v3542_v42  ;;  %v3547_v21 = vld [vmem:[#allocation37_spill] sm:$0xff]  ;;  %v3551_v42 = vld [vmem:[#allocation3_spill] sm:$0xff] }
 0x36f   : > { %v1226_v43 = vrot.slane %v1207_v37, 1  ;;  %v1224_v57 = vrot.slane %v1203_v40, 1  ;;  %v1247_v8 = vmul.f32 %v1223_v7, %v3543_v45  ;;  %v1248_v5 = vmul.f32 %v1223_v7, %v3544_v50 }
 0x370   : > { %v1279_v12 = vrot.slane %v1243_v49, 7  ;;  %v1282_v59 = vrot.slane %v1244_v52, 7  ;;  %v1284_v60 = vrot.slane %v1245_v0, 7  ;;  %v1286_v46 = vrot.slane %v1246_v26, 7 }
 0x371   : > { %v1225_v36 = vsel %vm1216_vm1, %v1222_v56, %v1224_v57  ;;  %v1227_v48 = vsel %vm1216_vm1, %v1224_v57, %v1226_v43  ;;  %v3123_v7 = vadd.f32 %v1092_v14, %v970_v13  ;;  %v1288_v16 = vrot.slane %v1247_v8, 7  ;;  %v3552_v8 = vld [vmem:[#allocation21_spill] sm:$0xff] }
 0x372   : > { %v1249_v4 = vmul.f32 %v1225_v36, %v3545_v58  ;;  %v1250_v11 = vmul.f32 %v1225_v36, %v3546_v24  ;;  %v3121_v39 = vpop.permute.xlu0 %1210  ;;  %v1290_v55 = vrot.slane %v1248_v5, 7  ;;  %v1280_v56 = vsel %vm1277_vm2, %v1278_v41, %v1279_v12  ;;  %v3556_v24 = vld [vmem:[#allocation5_spill] sm:$0xff] }
 0x373   : > { %v1346_v6 = vpop.permute.xlu1 %1345  ;;  %v1283_v20 = vsel %vm1277_vm2, %v1281_v18, %v1282_v59  ;;  %v1285_v49 = vsel %vm1277_vm2, %v1279_v12, %v1284_v60  ;;  %v1251_v52 = vmul.f32 %v1227_v48, %v3547_v21  ;;  %v1252_v37 = vmul.f32 %v1227_v48, %v3548_v15  ;;  %v3553_v12 = vld [vmem:[#allocation22_spill] sm:$0xff]  ;;  %v3555_v48 = vld [vmem:[#allocation25_spill] sm:$0xff] }
 0x374   : > { %v1287_v13 = vsel %vm1277_vm2, %v1282_v59, %v1286_v46  ;;  %v1292_v62 = vrot.slane %v1249_v4, 7  ;;  %v1294_v14 = vrot.slane %v1250_v11, 7  ;;  %v1228_v27 = vrot.slane %v3121_v39, 1  ;;  %v3554_v59 = vld [vmem:[#allocation23_spill] sm:$0xff]  ;;  %v3557_v18 = vld [vmem:[#allocation9_spill] sm:$0xff] }
 0x375   : > { %v1296_v63 = vrot.slane %v1251_v52, 7  ;;  %v1298_v23 = vrot.slane %v1252_v37, 7  ;;  %v3140_v0 = vrot.slane %v3550_v32, %v3549_v28  ;;  %v3144_v26 = vrot.slane %v3551_v42, %v3549_v28  ;;  %v3559_v32 = vld [vmem:[#allocation26_spill] sm:$0xff] }
 0x376   : > { %v1289_v57 = vsel %vm1277_vm2, %v1284_v60, %v1288_v16  ;;  %v1291_v45 = vsel %vm1277_vm2, %v1286_v46, %v1290_v55  ;;  %v3149_v50 = vadd.f32 %v1280_v56, %v3552_v8  ;;  %v1229_v5 = vsel %vm1216_vm1, %v1226_v43, %v1228_v27  ;;  %v3561_v8 = vld [vmem:[#allocation32_spill] sm:$0xff] }
 0x377   : > { %v1352_v40 = vpop.permute.xlu1 %1351  ;;  %v1349_v38 = vpop.permute.xlu0 %1348  ;;  %v3155_v41 = vadd.f32 %v1283_v20, %v3553_v12  ;;  %v3158_v36 = vadd.f32 %v1285_v49, %v3554_v59  ;;  %v3161_v58 = vadd.f32 %v1287_v13, %v3555_v48  ;;  %v1368_v4 = vrot.slane %v1346_v6, 7  ;;  %v3558_v13 = vld [vmem:[#allocation24_spill] sm:$0xff]  ;;  %v3562_v12 = vld [vmem:[#allocation6_spill] sm:$0xff]  ;;  %v3563_v48 = vld [vmem:[#allocation11_spill] sm:$0xff] }
 0x378   : > { %v1293_v60 = vsel %vm1277_vm2, %v1288_v16, %v1292_v62  ;;  %v1295_v46 = vsel %vm1277_vm2, %v1290_v55, %v1294_v14  ;;  %v3166_v11 = vmul.f32 %v1229_v5, %v3556_v24  ;;  %v3169_v56 = vmul.f32 %v1229_v5, %v3557_v18  ;;  %v3564_v18 = vld [vmem:[#allocation33_spill] sm:$0xff] }
 0x379   : > { %v1297_v43 = vsel %vm1277_vm2, %v1292_v62, %v1296_v63  ;;  %v1299_v20 = vsel %vm1277_vm2, %v1294_v14, %v1298_v23  ;;  %v1371_v49 = vrot.slane %v1352_v40, 7  ;;  %v1369_v21 = vrot.slane %v1349_v38, 7  ;;  %v3560_v40 = vld [vmem:[#allocation31_spill] sm:$0xff] }
 0x37a   : > { %v3473_v6 = vrot.slane %v3166_v11, 7  ;;  %v3472_v16 = vrot.slane %v3169_v56, 7  ;;  %v3176_v28 = vadd.f32 %v1289_v57, %v3558_v13  ;;  %v3179_v42 = vadd.f32 %v1291_v45, %v3559_v32 }
 0x37b   : > { %v1355_v52 = vpop.permute.xlu1 %1354  ;;  %v1358_v15 = vpop.permute.xlu0 %1357  ;;  %v1370_v62 = vsel %vm1277_vm2, %v1368_v4, %v1369_v21  ;;  %v1372_v14 = vsel %vm1277_vm2, %v1369_v21, %v1371_v49  ;;  %v3184_v38 = vadd.f32 %v1293_v60, %v3560_v40  ;;  %v3187_v5 = vadd.f32 %v1295_v46, %v3561_v8  ;;  %v3567_v8 = vld [vmem:[#allocation39_spill] sm:$0xff] }
 0x37c   : > { %v1373_v37 = vrot.slane %v1355_v52, 7  ;;  %v1375_v55 = vrot.slane %v1358_v15, 7  ;;  %v1392_v59 = vmul.f32 %v1368_v4, %v3562_v12  ;;  %v1394_v24 = vmul.f32 %v1370_v62, %v3563_v48  ;;  %v3565_v52 = vld [vmem:[#allocation34_spill] sm:$0xff] }
 0x37d   : > { %v3192_v57 = vadd.f32 %v1297_v43, %v3564_v18  ;;  %v3195_v45 = vadd.f32 %v1299_v20, %v3565_v52  ;;  %v3566_v15 = vld [vmem:[#allocation10_spill] sm:$0xff]  ;;  %v1396_v21 = vmul.f32 %v1372_v14, %v3024_v30  ;;  %v1301_v60 = vsel %vm1277_vm2, %v1296_v63, %v3473_v6 }
 0x37e   : > { %v1393_v13 = vmul.f32 %v1368_v4, %v3566_v15  ;;  %v1303_v46 = vsel %vm1277_vm2, %v1298_v23, %v3472_v16  ;;  %v1374_v40 = vsel %vm1277_vm2, %v1371_v49, %v1373_v37  ;;  %v1376_v43 = vsel %vm1277_vm2, %v1373_v37, %v1375_v55  ;;  %v3568_v23 = vld [vmem:[#allocation16_spill] sm:$0xff] }
 0x37f   : > { %v1364_v32 = vpop.permute.xlu0 %1363  ;;  %v1395_v20 = vmul.f32 %v1370_v62, %v3567_v8  ;;  %v1397_v12 = vmul.f32 %v1372_v14, %v3026_v25  ;;  %v1398_v4 = vmul.f32 %v1374_v40, %v3029_v10  ;;  %v1399_v30 = vmul.f32 %v1374_v40, %v3031_v47  ;;  %v1361_v15 = vpop.permute.xlu1 %1360  ;;  %v3569_v8 = vld [vmem:[#allocation17_spill] sm:$0xff] }
 0x380   : > { %v1429_v48 = vrot.slane %v1394_v24, 1  ;;  %v1434_v18 = vrot.slane %v1396_v21, 1  ;;  %v1400_v63 = vmul.f32 %v1376_v43, %v3035_v3  ;;  %v1401_v52 = vmul.f32 %v1376_v43, %v3037_v54 }
 0x381   : > { %v3214_v16 = vadd.f32 %v1301_v60, %v3568_v23  ;;  %v1428_v49 = vrot.slane %v1392_v59, 1  ;;  %v1431_v37 = vrot.slane %v1393_v13, 1  ;;  %v1438_v6 = vrot.slane %v1398_v4, 1 }
 0x382   : > { %v3217_v25 = vadd.f32 %v1303_v46, %v3569_v8  ;;  %v1440_v10 = vrot.slane %v1399_v30, 1  ;;  %v1442_v14 = vrot.slane %v1400_v63, 1  ;;  %v1444_v47 = vrot.slane %v1401_v52, 1 }
 0x383   : > { %v1367_v62 = vpop.permute.xlu0 %1366  ;;  %v1436_v24 = vrot.slane %v1397_v12, 1  ;;  %v1377_v21 = vrot.slane %v1361_v15, 7  ;;  %v1379_v40 = vrot.slane %v1364_v32, 7  ;;  %v1430_v54 = vsel %vm1216_vm1, %v1428_v49, %v1429_v48 }
 0x384   : > { %v1381_v3 = vrot.slane %v1367_v62, 7  ;;  %v1432_v43 = vrot.slane %v1395_v20, 1  ;;  %v1435_v60 = vsel %vm1216_vm1, %v1429_v48, %v1434_v18  ;;  %v1439_v59 = vsel %vm1216_vm1, %v1434_v18, %v1438_v6 }
 0x385   : > { %v1441_v13 = vsel %vm1216_vm1, %v1436_v24, %v1440_v10  ;;  %v1443_v4 = vsel %vm1216_vm1, %v1438_v6, %v1442_v14  ;;  %v1445_v46 = vsel %vm1216_vm1, %v1440_v10, %v1444_v47  ;;  %v1378_v30 = vsel %vm1277_vm2, %v1375_v55, %v1377_v21 }
 0x386   : > { %v1402_v12 = vmul.f32 %v1378_v30, %v3039_v34  ;;  %v1403_v32 = vmul.f32 %v1378_v30, %v3041_v9  ;;  %v1380_v63 = vsel %vm1277_vm2, %v1377_v21, %v1379_v40  ;;  %v1382_v20 = vsel %vm1277_vm2, %v1379_v40, %v1381_v3 }
 0x387   : > { %v1404_v48 = vmul.f32 %v1380_v63, %v3043_v31  ;;  %v1405_v18 = vmul.f32 %v1380_v63, %v3045_v33  ;;  %v1406_v52 = vmul.f32 %v1382_v20, %v3049_v29  ;;  %v1407_v6 = vmul.f32 %v1382_v20, %v3053_v53  ;;  %v1215_v53 = vpop.permute.xlu1 %1214 }
 0x388   : > { %v1446_v15 = vrot.slane %v1402_v12, 1  ;;  %v1448_v23 = vrot.slane %v1403_v32, 1  ;;  %v1408_v55 = vmul.f32 %v1381_v3, %v3081_v35  ;;  %v1409_v34 = vmul.f32 %v1381_v3, %v3083_v51 }
 0x389   : > { %v1433_v9 = vsel %vm1216_vm1, %v1431_v37, %v1432_v43  ;;  %v1437_v49 = vsel %vm1216_vm1, %v1432_v43, %v1436_v24  ;;  %v1478_v62 = vadd.f32 %v1430_v54, %v3149_v50  ;;  %v1480_v31 = vadd.f32 %v1435_v60, %v3158_v36 }
 0x38a   : > { %v1447_v33 = vsel %vm1216_vm1, %v1442_v14, %v1446_v15  ;;  %v1450_v8 = vrot.slane %v1404_v48, 1  ;;  %v1452_v29 = vrot.slane %v1405_v18, 1  ;;  %v1454_v10 = vrot.slane %v1406_v52, 1 }
 0x38b   : > { %v3242_v21 = vadd.f32 %v1439_v59, %v3176_v28  ;;  %v1483_v35 = vadd.f32 %v1441_v13, %v3179_v42  ;;  %v3246_v51 = vadd.f32 %v1443_v4, %v3184_v38  ;;  %v1485_v37 = vadd.f32 %v1445_v46, %v3187_v5 }
 0x38c   : > { %v1449_v50 = vsel %vm1216_vm1, %v1444_v47, %v1448_v23  ;;  %v1456_v24 = vrot.slane %v1407_v6, 1  ;;  %v1458_v36 = vrot.slane %v1408_v55, 1  ;;  %v1460_v40 = vrot.slane %v1409_v34, 1 }
 0x38d   : > { %v3251_v14 = vadd.f32 %v1447_v33, %v3192_v57  ;;  %v1230_v3 = vrot.slane %v1215_v53, 1  ;;  %v1479_v54 = vadd.f32 %v1433_v9, %v3155_v41  ;;  %v1481_v28 = vadd.f32 %v1437_v49, %v3161_v58 }
 0x38e   : > { %v1451_v42 = vsel %vm1216_vm1, %v1446_v15, %v1450_v8  ;;  %v1453_v38 = vsel %vm1216_vm1, %v1448_v23, %v1452_v29  ;;  %v3258_v43 = vsel %vm1216_vm1, %v1450_v8, %v1454_v10  ;;  %v1502_v5 = vadd.f32 %v3144_v26, %v1478_v62 }
 0x38f   : > { %v1231_v47 = vsel %vm1216_vm1, %v1228_v27, %v1230_v3  ;;  %v1257_v57 = vmul.f32 %v1230_v3, %v3127_v19  ;;  %v1258_v60 = vmul.f32 %v1230_v3, %v3130_v2  ;;  %v1503_v41 = vadd.f32 %v3140_v0, %v1479_v54 }
 0x390   : > { %v1255_v58 = vmul.f32 %v1231_v47, %v3123_v7  ;;  %v1256_v59 = vmul.f32 %v1231_v47, %v3125_v61  ;;  %v1505_v13 = vadd.f32 %v3140_v0, %v1481_v28  ;;  %v1504_v4 = vadd.f32 %v3144_v26, %v1480_v31 }
 0x391   : > { %v3272_v46 = vadd.f32 %v1451_v42, %v3214_v16  ;;  %v3275_v39 = vsel %vm1216_vm1, %v1452_v29, %v1456_v24  ;;  %v3278_v19 = vsel %vm1216_vm1, %v1454_v10, %v1458_v36  ;;  %v1535_v2 = vmul.f32 %v1503_v41, %v1503_v41 }
 0x392   : > { %v3281_v27 = vsel %vm1216_vm1, %v1456_v24, %v1460_v40  ;;  %v1304_v7 = vrot.slane %v1255_v58, 7  ;;  %v1306_v30 = vrot.slane %v1256_v59, 7  ;;  %v1537_v61 = vmul.f32 %v1505_v13, %v1505_v13 }
 0x393   : > { %v1308_v12 = vrot.slane %v1257_v57, 7  ;;  %v1310_v32 = vrot.slane %v1258_v60, 7  ;;  %v1551_v63 = vmul.f32 0.044715, %v1535_v2  ;;  %v1534_v20 = vmul.f32 %v1502_v5, %v1502_v5 }
 0x394   : > { %v3570_v16 = vrot.slane %v3166_v11, 7  ;;  %v1536_v18 = vmul.f32 %v1504_v4, %v1504_v4  ;;  %v3287_v52 = vadd.f32 %v3140_v0, %v1483_v35  ;;  %v3290_v6 = vadd.f32 %v3140_v0, %v1485_v37 }
 0x395   : > { %v3292_v15 = vmul.f32 0.5, %v1503_v41  ;;  %v3294_v23 = vmul.f32 0.5, %v1505_v13  ;;  %v3296_v55 = vmul.f32 0.5, %v1502_v5  ;;  %v1487_v34 = vadd.f32 %v1449_v50, %v3195_v45 }
 0x396   : > { %v1305_v48 = vsel %vm1277_vm2, %v3570_v16, %v1304_v7  ;;  %v3571_v9 = vrot.slane %v3169_v56, 7  ;;  %v1553_v49 = vmul.f32 0.044715, %v1537_v61  ;;  %v1567_v62 = vadd.f32 1.0, %v1551_v63 }
 0x397   : > { %v1550_v31 = vmul.f32 0.044715, %v1534_v20  ;;  %v1309_v33 = vsel %vm1277_vm2, %v1304_v7, %v1308_v12  ;;  %v1311_v8 = vsel %vm1277_vm2, %v1306_v30, %v1310_v32  ;;  %v1340_v29 = vadd.f32 %v1305_v48, %v3096_v44 }
 0x398   : > { %v1307_v11 = vsel %vm1277_vm2, %v3571_v9, %v1306_v30  ;;  %v3305_v10 = vmul.f32 0.5, %v1504_v4  ;;  %v1569_v53 = vadd.f32 1.0, %v1553_v49  ;;  %v1583_v35 = vmul.f32 0.7978846, %v1567_v62 }
 0x399   : > { %v1552_v37 = vmul.f32 0.044715, %v1536_v18  ;;  %v1566_v24 = vadd.f32 1.0, %v1550_v31  ;;  %v1341_v45 = vadd.f32 %v1307_v11, %v3098_v22  ;;  %v1539_v56 = vmul.f32 %v3287_v52, %v3287_v52 }
 0x39a   : > { %v1541_v50 = vmul.f32 %v3290_v6, %v3290_v6  ;;  %v1489_v36 = vadd.f32 %v1453_v38, %v3217_v25  ;;  %v1585_v40 = vmul.f32 0.7978846, %v1569_v53  ;;  %v1599_v3 = vmul.f32 %v1583_v35, %v1503_v41 }
 0x39b   : > { %v1568_v54 = vadd.f32 1.0, %v1552_v37  ;;  %v1582_v44 = vmul.f32 0.7978846, %v1566_v24  ;;  %v1555_v28 = vmul.f32 0.044715, %v1539_v56  ;;  %v3314_v47 = vadd.f32 %v3140_v0, %v1487_v34 }
 0x39c   : > { %v1557_v42 = vmul.f32 0.044715, %v1541_v50  ;;  %v3317_v57 = vadd.f32 %v3140_v0, %v1489_v36  ;;  %v1601_v22 = vmul.f32 %v1585_v40, %v1505_v13  ;;  %2197 = vtanh.f32 %v1599_v3 }
 0x39d   : > { %v1584_v60 = vmul.f32 0.7978846, %v1568_v54  ;;  %v1598_v58 = vmul.f32 %v1582_v44, %v1502_v5  ;;  %v1342_v59 = vadd.f32 %v1309_v33, %v3100_v17  ;;  %v1343_v25 = vadd.f32 %v1311_v8, %v3115_v1 }
 0x39e   : > { %v1571_v38 = vadd.f32 1.0, %v1555_v28  ;;  %v1573_v41 = vadd.f32 1.0, %v1557_v42  ;;  %2199 = vtanh.f32 %v1601_v22  ;;  %v1543_v7 = vmul.f32 %v3314_v47, %v3314_v47 }
 0x39f   : > { %v1600_v2 = vmul.f32 %v1584_v60, %v1504_v4  ;;  %v1545_v30 = vmul.f32 %v3317_v57, %v3317_v57  ;;  %2201 = vtanh.f32 %v1598_v58  ;;  %v3327_v5 = vadd.f32 %v3144_v26, %v3242_v21 }
 0x3a0   : > { %v1587_v61 = vmul.f32 0.7978846, %v1571_v38  ;;  %v1589_v13 = vmul.f32 0.7978846, %v1573_v41  ;;  %v1559_v17 = vmul.f32 0.044715, %v1543_v7  ;;  %v3331_v12 = vadd.f32 %v3144_v26, %v3246_v51 }
 0x3a1   : > { %2203 = vtanh.f32 %v1600_v2  ;;  %v1561_v1 = vmul.f32 0.044715, %v1545_v30  ;;  %v1491_v4 = vadd.f32 %v3275_v39, %v1341_v45  ;;  %v1538_v20 = vmul.f32 %v3327_v5, %v3327_v5 }
 0x3a2   : > { %v1603_v32 = vmul.f32 %v1587_v61, %v3287_v52  ;;  %v1605_v63 = vmul.f32 %v1589_v13, %v3290_v6  ;;  %v1493_v16 = vadd.f32 %v3281_v27, %v1343_v25  ;;  %v1575_v21 = vadd.f32 1.0, %v1559_v17 }
 0x3a3   : > { %v1577_v48 = vadd.f32 1.0, %v1561_v1  ;;  %v1540_v18 = vmul.f32 %v3331_v12, %v3331_v12  ;;  %v1554_v34 = vmul.f32 0.044715, %v1538_v20  ;;  %v3343_v51 = vadd.f32 %v3144_v26, %v3251_v14 }
 0x3a4   : > { %2205 = vtanh.f32 %v1603_v32  ;;  %v3347_v39 = vadd.f32 %v3144_v26, %v3272_v46  ;;  %v1591_v9 = vmul.f32 0.7978846, %v1575_v21  ;;  %v1490_v27 = vadd.f32 %v3258_v43, %v1340_v29 }
 0x3a5   : > { %2207 = vtanh.f32 %v1605_v63  ;;  %v1593_v11 = vmul.f32 0.7978846, %v1577_v48  ;;  %v1556_v49 = vmul.f32 0.044715, %v1540_v18  ;;  %v1523_v62 = vmul.f32 0.5, %v3287_v52 }
 0x3a6   : > { %v1570_v31 = vadd.f32 1.0, %v1554_v34  ;;  %v1542_v33 = vmul.f32 %v3343_v51, %v3343_v51  ;;  %v2198_v8 = vpop.eup %2197  ;;  %v1607_v14 = vmul.f32 %v1591_v9, %v3314_v47  ;;  %v1544_v46 = vmul.f32 %v3347_v39, %v3347_v39 }
 0x3a7   : > { %v1609_v53 = vmul.f32 %v1593_v11, %v3317_v57  ;;  %v1572_v35 = vadd.f32 1.0, %v1556_v49  ;;  %v1631_v37 = vadd.f32 1.0, %v2198_v8  ;;  %v3358_v43 = vadd.f32 %v3140_v0, %v1491_v4 }
 0x3a8   : > { %v1586_v24 = vmul.f32 0.7978846, %v1570_v31  ;;  %v1558_v45 = vmul.f32 0.044715, %v1542_v33  ;;  %v2200_v52 = vpop.eup %2199  ;;  %2209 = vtanh.f32 %v1607_v14  ;;  %v1560_v56 = vmul.f32 0.044715, %v1544_v46 }
 0x3a9   : > { %v1588_v29 = vmul.f32 0.7978846, %v1572_v35  ;;  %v3361_v50 = vadd.f32 %v3140_v0, %v1493_v16  ;;  %v2202_v36 = vpop.eup %2201  ;;  %v1633_v40 = vadd.f32 1.0, %v2200_v52  ;;  %v1647_v3 = vmul.f32 %v1631_v37, %v3292_v15 }
 0x3aa   : > { %2211 = vtanh.f32 %v1609_v53  ;;  %v1602_v54 = vmul.f32 %v1586_v24, %v3327_v5  ;;  %v1630_v28 = vadd.f32 1.0, %v2202_v36  ;;  %v1574_v22 = vadd.f32 1.0, %v1558_v45 }
 0x3ab   : > { %v2204_v44 = vpop.eup %2203  ;;  %v1604_v42 = vmul.f32 %v1588_v29, %v3331_v12  ;;  %v1576_v60 = vadd.f32 1.0, %v1560_v56  ;;  %v1492_v58 = vadd.f32 %v3278_v19, %v1342_v59  ;;  %v1649_v25 = vmul.f32 %v1633_v40, %v3294_v23 }
 0x3ac   : > { %v1632_v38 = vadd.f32 1.0, %v2204_v44  ;;  %2213 = vtanh.f32 %v1602_v54  ;;  %v1646_v0 = vmul.f32 %v1630_v28, %v3296_v55  ;;  %v1590_v41 = vmul.f32 0.7978846, %v1574_v22 }
 0x3ad   : > { %2215 = vtanh.f32 %v1604_v42  ;;  %v1592_v15 = vmul.f32 0.7978846, %v1576_v60  ;;  %v1663_v7 = vpack.c.bf16 %v1649_v25, %v1647_v3  ;;  %v1525_v61 = vmul.f32 0.5, %v3290_v6 }
 0x3ae   : > { %v2206_v2 = vpop.eup %2205  ;;  %v1648_v30 = vmul.f32 %v1632_v38, %v3305_v10  ;;  %v1547_v13 = vmul.f32 %v3358_v43, %v3358_v43  ;;  %v1606_v23 = vmul.f32 %v1590_v41, %v3343_v51  ;;  %v1549_v55 = vmul.f32 %v3361_v50, %v3361_v50 }
 0x3af   : > { %v2208_v17 = vpop.eup %2207  ;;  %v1635_v19 = vadd.f32 1.0, %v2206_v2  ;;  %v1608_v59 = vmul.f32 %v1592_v15, %v3347_v39  ;;  %1837 = vmatprep.mubr.bf16.mxu0 %v1663_v7  ;;  %v3378_v10 = vadd.f32 %v3144_v26, %v1490_v27  ;;  %v3381_v20 = vadd.f32 %v3144_v26, %v1492_v58 }
 0x3b0   : > { %v1662_v1 = vpack.c.bf16 %v1648_v30, %v1646_v0  ;;  %v1637_v4 = vadd.f32 1.0, %v2208_v17  ;;  %v1563_v32 = vmul.f32 0.044715, %v1547_v13  ;;  %2217 = vtanh.f32 %v1606_v23 }
 0x3b1   : > { %v1651_v6 = vmul.f32 %v1635_v19, %v1523_v62  ;;  %v1565_v63 = vmul.f32 0.044715, %v1549_v55  ;;  %2219 = vtanh.f32 %v1608_v59  ;;  %v1546_v34 = vmul.f32 %v3378_v10, %v3378_v10 }
 0x3b2   : > { %1838 = vmatmul.mubr.bf16.vlgmr.msra.gmra.mrb[0].mxu0 %v1662_v1  ;;  %v1653_v16 = vmul.f32 %v1637_v4, %v1525_v61  ;;  %v1579_v21 = vadd.f32 1.0, %v1563_v32  ;;  %v2210_v48 = vpop.eup %2209  ;;  %v1548_v9 = vmul.f32 %v3381_v20, %v3381_v20  ;;  %v1527_v27 = vmul.f32 0.5, %v3314_v47 }
 0x3b3   : > { %v1581_v18 = vadd.f32 1.0, %v1565_v63  ;;  %v1639_v62 = vadd.f32 1.0, %v2210_v48  ;;  %v1529_v26 = vmul.f32 0.5, %v3317_v57  ;;  %v1562_v14 = vmul.f32 0.044715, %v1546_v34 }
 0x3b4   : > { %v2212_v11 = vpop.eup %2211  ;;  %v1665_v49 = vpack.c.bf16 %v1653_v16, %v1651_v6  ;;  %v1595_v31 = vmul.f32 0.7978846, %v1579_v21  ;;  %v1522_v46 = vmul.f32 0.5, %v3327_v5  ;;  %v1564_v24 = vmul.f32 0.044715, %v1548_v9 }
 0x3b5   : > { %v1641_v33 = vadd.f32 1.0, %v2212_v11  ;;  %v1597_v8 = vmul.f32 0.7978846, %v1581_v18  ;;  %v1655_v35 = vmul.f32 %v1639_v62, %v1527_v27  ;;  %v1578_v56 = vadd.f32 1.0, %v1562_v14  ;;  %v2028_v48 = vld [vmem:[%s3441_s6] ss:$0 sm:$0xff] }
 0x3b6   : > { %v2214_v53 = vpop.eup %2213  ;;  %1845 = vmatprep.mubr.bf16.mxu0 %v1665_v49  ;;  %v1611_v37 = vmul.f32 %v1595_v31, %v3358_v43  ;;  %v1524_v36 = vmul.f32 0.5, %v3331_v12  ;;  %v1580_v40 = vadd.f32 1.0, %v1564_v24  ;;  %v1526_v25 = vmul.f32 0.5, %v3343_v51 }
 0x3b7   : > { %v2216_v45 = vpop.eup %2215  ;;  %v1657_v52 = vmul.f32 %v1641_v33, %v1529_v26  ;;  %v1634_v29 = vadd.f32 1.0, %v2214_v53  ;;  %v1613_v47 = vmul.f32 %v1597_v8, %v3361_v50  ;;  %v1594_v44 = vmul.f32 0.7978846, %v1578_v56 }
 0x3b8   : > { %v1636_v57 = vadd.f32 1.0, %v2216_v45  ;;  %2221 = vtanh.f32 %v1611_v37  ;;  %v1596_v5 = vmul.f32 0.7978846, %v1580_v40  ;;  %v1528_v0 = vmul.f32 0.5, %v3347_v39 }
 0x3b9   : > { %v1667_v3 = vpack.c.bf16 %v1657_v52, %v1655_v35  ;;  %v1650_v54 = vmul.f32 %v1634_v29, %v1522_v46  ;;  %2223 = vtanh.f32 %v1613_v47  ;;  %v1610_v22 = vmul.f32 %v1594_v44, %v3378_v10 }
 0x3ba   : > { %v1652_v28 = vmul.f32 %v1636_v57, %v1524_v36  ;;  %v2218_v42 = vpop.eup %2217  ;;  %v1612_v12 = vmul.f32 %v1596_v5, %v3381_v20  ;;  %v1531_v13 = vmul.f32 0.5, %v3358_v43  ;;  %v1533_v51 = vmul.f32 0.5, %v3361_v50 }
 0x3bb   : > { %1853 = vmatprep.mubr.bf16.mxu1 %v1667_v3  ;;  %v2220_v60 = vpop.eup %2219  ;;  %v1638_v38 = vadd.f32 1.0, %v2218_v42  ;;  %2225 = vtanh.f32 %v1610_v22  ;;  %v1530_v4 = vmul.f32 0.5, %v3378_v10  ;;  %v1532_v6 = vmul.f32 0.5, %v3381_v20 }
 0x3bc   : > { %v1664_v58 = vpack.c.bf16 %v1652_v28, %v1650_v54  ;;  %v1640_v41 = vadd.f32 1.0, %v2220_v60  ;;  %2227 = vtanh.f32 %v1612_v12 }
 0x3bd   : > { %v1654_v15 = vmul.f32 %v1638_v38, %v1526_v25 }
 0x3be   : > { %1846 = vmatmul.mubr.bf16.gmra.mrb[4].mxu0 %v1664_v58  ;;  %v1656_v2 = vmul.f32 %v1640_v41, %v1528_v0 }
 0x3c0   : > { %v1666_v7 = vpack.c.bf16 %v1656_v2, %v1654_v15 }
 0x3c2   : > { %v2222_v30 = vpop.eup %2221  ;;  %1854 = vmatmul.mubr.bf16.vlgmr.msra.gmra.mrb[0].mxu1 %v1666_v7 }
 0x3c3   : > { %v2224_v61 = vpop.eup %2223  ;;  %v1643_v17 = vadd.f32 1.0, %v2222_v30 }
 0x3c4   : > { %v1645_v19 = vadd.f32 1.0, %v2224_v61 }
 0x3c5   : > { %v1659_v23 = vmul.f32 %v1643_v17, %v1531_v13  ;;  %v2226_v55 = vpop.eup %2225 }
 0x3c6   : > { %v1661_v59 = vmul.f32 %v1645_v19, %v1533_v51  ;;  %v2228_v39 = vpop.eup %2227  ;;  %v1642_v32 = vadd.f32 1.0, %v2226_v55 }
 0x3c7   : > { %v1644_v63 = vadd.f32 1.0, %v2228_v39 }
 0x3c8   : > { %v1669_v1 = vpack.c.bf16 %v1661_v59, %v1659_v23  ;;  %v1658_v16 = vmul.f32 %v1642_v32, %v1530_v4 }
 0x3c9   : > { %v1660_v43 = vmul.f32 %v1644_v63, %v1532_v6 }
 0x3ca   : > { %1861 = vmatprep.mubr.bf16.mxu1 %v1669_v1 }
 0x3cb   : > { %v1668_v21 = vpack.c.bf16 %v1660_v43, %v1658_v16 }
 0x3cd   : > { %1862 = vmatmul.mubr.bf16.gmra.mrb[4].mxu1 %v1668_v21 }
 0x485   : > { %v2069_v50 = vpop.f32.mrb[0].mxu0 }
 0x486   : > { %v2070_v18 = vpop.f32.mrb[1].mxu0 }
 0x487   : > { %v2071_v34 = vadd.f32 %v2070_v18, %v2069_v50  ;;  %v2072_v10 = vpop.f32.mrb[2].mxu0 }
 0x488   : > { %v2073_v9 = vpop.f32.mrb[3].mxu0 }
 0x489   : > { %v1840_v11 = vadd.f32 %v2071_v34, %v2028_v48  ;;  %v2074_v49 = vadd.f32 %v2073_v9, %v2072_v10 }
 0x48b   : > { %1870 = vst.msk [vmem:[%s2443_s26] sm:$0xff] %vm548_vm0, %v1840_v11  ;;  %v1843_v20 = vadd.f32 %v2074_v49, %v2028_v48 }
 0x48d   : > { %1871 = vst.msk [vmem:[%s2443_s26 + $0x8] sm:$0xff] %vm548_vm0, %v1843_v20 }
 0x491   : > { %v2075_v27 = vpop.f32.mrb[4].mxu0 }
 0x492   : > { %v2076_v62 = vpop.f32.mrb[5].mxu0 }
 0x493   : > { %v2077_v31 = vadd.f32 %v2076_v62, %v2075_v27  ;;  %v2078_v26 = vpop.f32.mrb[6].mxu0 }
 0x494   : > { %v2079_v33 = vpop.f32.mrb[7].mxu0 }
 0x495   : > { %v1848_v8 = vadd.f32 %v2077_v31, %v2028_v48  ;;  %v2080_v14 = vadd.f32 %v2079_v33, %v2078_v26  ;;  %v2081_v53 = vpop.f32.mrb[0].mxu1 }
 0x496   : > { %v2082_v35 = vpop.f32.mrb[1].mxu1 }
 0x497   : > { %1872 = vst.msk [vmem:[%s2443_s26 + $0x10] sm:$0xff] %vm548_vm0, %v1848_v8  ;;  %v1851_v46 = vadd.f32 %v2080_v14, %v2028_v48  ;;  %v2083_v37 = vadd.f32 %v2082_v35, %v2081_v53  ;;  %v2084_v24 = vpop.f32.mrb[2].mxu1 }
 0x498   : > { %v2085_v45 = vpop.f32.mrb[3].mxu1 }
 0x499   : > { %1873 = vst.msk [vmem:[%s2443_s26 + $0x18] sm:$0xff] %vm548_vm0, %v1851_v46  ;;  %v1856_v52 = vadd.f32 %v2083_v37, %v2028_v48  ;;  %v2086_v29 = vadd.f32 %v2085_v45, %v2084_v24 }
 0x49b   : > { %1874 = vst.msk [vmem:[%s2443_s26 + $0x20] sm:$0xff] %vm548_vm0, %v1856_v52  ;;  %v1859_v47 = vadd.f32 %v2086_v29, %v2028_v48 }
 0x49d   : > { %1875 = vst.msk [vmem:[%s2443_s26 + $0x28] sm:$0xff] %vm548_vm0, %v1859_v47 }
 0x4a0   : > { %v2087_v56 = vpop.f32.mrb[4].mxu1 }
 0x4a1   : > { %v2088_v36 = vpop.f32.mrb[5].mxu1 }
 0x4a2   : > { %v2089_v57 = vadd.f32 %v2088_v36, %v2087_v56  ;;  %v2090_v40 = vpop.f32.mrb[6].mxu1 }
 0x4a3   : > { %v2091_v3 = vpop.f32.mrb[7].mxu1 }
 0x4a4   : > { %v1864_v54 = vadd.f32 %v2089_v57, %v2028_v48  ;;  %v2092_v44 = vadd.f32 %v2091_v3, %v2090_v40 }
 0x4a6   : > { %1876 = vst.msk [vmem:[%s2443_s26 + $0x30] sm:$0xff] %vm548_vm0, %v1864_v54  ;;  %v1867_v28 = vadd.f32 %v2092_v44, %v2028_v48 }
 0x4a8   : > { %1877 = vst.msk [vmem:[%s2443_s26 + $0x38] sm:$0xff] %vm548_vm0, %v1867_v28 }
 0x4a9 PF: > { %s18_s9 = sadd.s32 1, %s2267_s9   ;;  %s3572_s27 = smov %s2259_s29 }
 0x4aa   : > { %p15_p0 = scmp.ge.s32.totalorder %s18_s9, 10   ;;  %s3573_s28 = smov %s2263_s30 }
 0x4ab   : > { %s3574_s29 = smov %s3577_s10  ;;  %s3575_s30 = smov %s3581_s11 }
 0x4ac   :  { %17 = sbr.rel (!%p15_p0) target bundleno = 3 (0x3), region = 104 }

</bundles_post_ra>
